<compile_context>
chip_gen: v6e
topology: v6e:2x2x1
jax: 0.10.0
libtpu: 0.0.40
codegen_flags: <defaults>
</compile_context>

<pallas_src>
import functools

import jax
import jax.numpy as jnp
import numpy as np
from jax.experimental import pallas as pl
from jax.experimental.pallas import tpu as pltpu

# 40 MiB scoped VMEM: above the 16–32 MiB defaults, and leaves >= 24 MiB headroom
# for double-buffered blocks / Mosaic scratch on v7x's 64 MiB physical VMEM.
# (v5e / v6e have 128 MiB and could go higher; 40 MiB is the portable choice.)
VMEM_LIMIT = 40 * 1024 * 1024

# On v6e / v7x (256-wide MXU) tq=256 fills more MXU output columns for large N;
# keep 128 as the portable default (N in the demo is only 256).
DEFAULT_TQ = 128


# ----------------------------------------------------------------------------
# knn (glue, plain JAX): same semantics as torch knn() — k largest of -||xi-xj||^2
# pdist inner product on bf16 inputs with f32 accumulation (MXU-rate matmul).
# ----------------------------------------------------------------------------
def knn_idx(x_cf, k):
    # x_cf: (B, C, N) channels-first (same convention as the torch module input).
    xb = x_cf.astype(jnp.bfloat16)
    inner = 2.0 * jnp.einsum("bcn,bcm->bnm", xb, xb,
                             preferred_element_type=jnp.float32)
    xx = jnp.sum(x_cf * x_cf, axis=1)                  # (B, N) f32
    pdist = inner - xx[:, :, None] - xx[:, None, :]    # = -||xi - xj||^2
    _, idx = jax.lax.top_k(pdist, k)                   # (B, N, k)
    return idx.astype(jnp.int32)


# ----------------------------------------------------------------------------
# Edge-conv block, one-hot gather variant (small/medium N).
# Per (batch b, query-point tile t):
#   t==0: hoist p = wd @ x (bf16) into a per-batch VMEM scratch.
#   every t: stacked one-hot -> single (Cout,N)@(N,k*TQ) MXU matmul, folded BN,
#   LeakyReLU(0.2), max over k lane-aligned slices, fused residual 1x1 conv.
# ----------------------------------------------------------------------------
def _edge_onehot_kernel(has_res, *refs):
    if has_res:
        (idx_ref, x_ref, wd_ref, wcmwd_ref, scale_ref, shift_ref, wres_ref,
         out_ref, p_ref) = refs
    else:
        (idx_ref, x_ref, wd_ref, wcmwd_ref, scale_ref, shift_ref,
         out_ref, p_ref) = refs
        wres_ref = None

    k, tq = idx_ref.shape          # (k, TQ) int32 block
    n = x_ref.shape[1]             # full point count (x block resident across t)
    q0 = pl.multiple_of(pl.program_id(1) * tq, tq)

    # --- hoisted projection (once per batch; t is "arbitrary" so p persists) ---
    @pl.when(pl.program_id(1) == 0)
    def _():
        p_ref[...] = jnp.dot(wd_ref[...], x_ref[...],
                             preferred_element_type=jnp.float32
                             ).astype(jnp.bfloat16)           # (Cout, N) bf16

    x_q = x_ref[:, pl.ds(q0, tq)]                             # (Cin, TQ)
    # project-then-gather reorder:
    #   wd @ (x[nb] - x_q) + wc @ x_q == (wd @ x)[:, nb] + (wc - wd) @ x_q
    base = jnp.dot(wcmwd_ref[...], x_q,
                   preferred_element_type=jnp.float32)        # (Cout, TQ)

    scale = scale_ref[...]                                    # (Cout, 1) folded BN
    shift = shift_ref[...]
    idx_t = idx_ref[...]                                      # (k, TQ) int32
    iota_col = jax.lax.broadcasted_iota(jnp.int32, (n, 1), 0)  # (N, 1) column

    # Stacked one-hot: (N, k*TQ) bf16, single MXU matmul instead of k small ones.
    onehots = [(iota_col == idx_t[j:j + 1, :]).astype(jnp.bfloat16)
               for j in range(k)]
    onehot = jnp.concatenate(onehots, axis=1)                 # (N, k*TQ)
    g = jnp.dot(p_ref[...], onehot,
                preferred_element_type=jnp.float32)           # (Cout, k*TQ)

    base_k = jnp.concatenate([base] * k, axis=1)              # (Cout, k*TQ)
    h = (g + base_k) * scale + shift
    h = jnp.maximum(h, 0.2 * h)                               # LeakyReLU(0.2)

    # max over k (lane-aligned 128-wide static slices)
    acc = h[:, 0:tq]
    for j in range(1, k):
        acc = jnp.maximum(acc, h[:, j * tq:(j + 1) * tq])

    if has_res:  # fused 1x1 residual conv on this block's input features
        acc = acc + jnp.dot(wres_ref[...], x_q, preferred_element_type=jnp.float32)
    out_ref[...] = acc                                        # (Cout, TQ)


# ----------------------------------------------------------------------------
# Edge-conv block, real-gather variant (large N): projection + gather happen in
# the wrapper (linear in N*k), kernel is the lane-dense epilogue only.
# ----------------------------------------------------------------------------
def _edge_gather_kernel(has_res, *refs):
    if has_res:
        g_ref, x_ref, wcmwd_ref, scale_ref, shift_ref, wres_ref, out_ref = refs
    else:
        g_ref, x_ref, wcmwd_ref, scale_ref, shift_ref, out_ref = refs
        wres_ref = None

    k = g_ref.shape[0]                                        # (k, Cout, TQ) block
    x_q = x_ref[...]                                          # (Cin, TQ)
    base = jnp.dot(wcmwd_ref[...], x_q, preferred_element_type=jnp.float32)
    scale = scale_ref[...]
    shift = shift_ref[...]

    acc = None
    for j in range(k):                                        # k small: unrolled
        h_j = (g_ref[j].astype(jnp.float32) + base) * scale + shift
        h_j = jnp.maximum(h_j, 0.2 * h_j)                     # LeakyReLU(0.2)
        acc = h_j if acc is None else jnp.maximum(acc, h_j)

    if has_res:
        acc = acc + jnp.dot(wres_ref[...], x_q, preferred_element_type=jnp.float32)
    out_ref[...] = acc


def edge_block(x, idx_t, w, scale, shift, wres=None, *, tq=DEFAULT_TQ,
               gather="auto"):
    # x: (B, Cin, N) f32, idx_t: (B, k, N) int32, w: (Cout, 2*Cin)
    B, Cin, N = x.shape
    k = idx_t.shape[1]
    Cout = w.shape[0]
    assert w.shape[1] == 2 * Cin
    assert N % tq == 0

    has_res = wres is not None
    wd, wc = w[:, :Cin], w[:, Cin:]   # split: [diff-channels | center-channels]
    wcmwd = wc - wd                   # precomputed (wc - wd) once in the wrapper
    scale2 = scale.reshape(Cout, 1)
    shift2 = shift.reshape(Cout, 1)

    use_take = (gather == "take") or (gather == "auto" and N >= 1024)

    if use_take:
        # project (tiny matmul) then real gather in the wrapper; kernel = epilogue.
        p = jnp.einsum("oc,bcn->bon", wd, x).astype(jnp.bfloat16)   # (B, Cout, N)
        g = jax.vmap(lambda pb, ib: pb[:, ib])(p, idx_t)            # (B, Cout, k, N)
        g = jnp.transpose(g, (0, 2, 1, 3))                          # (B, k, Cout, N)
        kernel = functools.partial(_edge_gather_kernel, has_res)
        in_specs = [
            pl.BlockSpec((pl.Squeezed(), k, Cout, tq), lambda b, t: (b, 0, 0, t)),
            pl.BlockSpec((pl.Squeezed(), Cin, tq), lambda b, t: (b, 0, t)),
            pl.BlockSpec((Cout, Cin), lambda b, t: (0, 0)),          # wc - wd
            pl.BlockSpec((Cout, 1), lambda b, t: (0, 0)),            # BN scale
            pl.BlockSpec((Cout, 1), lambda b, t: (0, 0)),            # BN shift
        ]
        args = [g, x, wcmwd, scale2, shift2]
        scratch = []
        dims = ("parallel", "parallel")          # no cross-tile state
    else:
        kernel = functools.partial(_edge_onehot_kernel, has_res)
        in_specs = [
            pl.BlockSpec((pl.Squeezed(), k, tq), lambda b, t: (b, 0, t)),
            pl.BlockSpec((pl.Squeezed(), Cin, N), lambda b, t: (b, 0, 0)),  # resident
            pl.BlockSpec((Cout, Cin), lambda b, t: (0, 0)),          # wd (t==0 only)
            pl.BlockSpec((Cout, Cin), lambda b, t: (0, 0)),          # wc - wd
            pl.BlockSpec((Cout, 1), lambda b, t: (0, 0)),            # BN scale
            pl.BlockSpec((Cout, 1), lambda b, t: (0, 0)),            # BN shift
        ]
        args = [idx_t, x, wd, wcmwd, scale2, shift2]
        scratch = [pltpu.VMEM((Cout, N), jnp.bfloat16)]   # hoisted projected feats
        # t must be sequential ("arbitrary"): the p scratch persists across t.
        # b stays "parallel" so both v7x TensorCores split batches.
        dims = ("parallel", "arbitrary")

    if has_res:
        in_specs.append(pl.BlockSpec((Cout, Cin), lambda b, t: (0, 0)))
        args.append(wres)

    return pl.pallas_call(
        kernel,
        out_shape=jax.ShapeDtypeStruct((B, Cout, N), jnp.float32),
        grid=(B, N // tq),
        in_specs=in_specs,
        out_specs=pl.BlockSpec((pl.Squeezed(), Cout, tq), lambda b, t: (b, 0, t)),
        scratch_shapes=scratch,
        compiler_params=pltpu.CompilerParams(
            dimension_semantics=dims,
            vmem_limit_bytes=VMEM_LIMIT),
    )(*args)


# ----------------------------------------------------------------------------
# Head kernel: conv5 (1x1 Conv1d) fused with the channel concat (x1..x4 read
# directly, w5 split into 4 column blocks), folded BN + LeakyReLU, running
# max / running mean reduction over N tiles (accumulators live in the resident
# output blocks).  bf16 cast happens in-kernel (no wrapper astype HBM pass).
# ----------------------------------------------------------------------------
def _head_kernel(npts, x1_ref, x2_ref, x3_ref, x4_ref,
                 w1_ref, w2_ref, w3_ref, w4_ref,
                 scale_ref, shift_ref, max_ref, mean_ref):
    t = pl.program_id(1)
    h = jnp.dot(w1_ref[...], x1_ref[...].astype(jnp.bfloat16),
                preferred_element_type=jnp.float32)           # (Cout5, TN)
    h = h + jnp.dot(w2_ref[...], x2_ref[...].astype(jnp.bfloat16),
                    preferred_element_type=jnp.float32)
    h = h + jnp.dot(w3_ref[...], x3_ref[...].astype(jnp.bfloat16),
                    preferred_element_type=jnp.float32)
    h = h + jnp.dot(w4_ref[...], x4_ref[...].astype(jnp.bfloat16),
                    preferred_element_type=jnp.float32)
    h = h * scale_ref[...] + shift_ref[...]
    h = jnp.maximum(h, 0.2 * h)                               # LeakyReLU(0.2)
    tmax = jnp.max(h, axis=1, keepdims=True)                  # (Cout5, 1)
    tsum = jnp.sum(h, axis=1, keepdims=True)

    @pl.when(t == 0)
    def _():
        max_ref[...] = tmax
        mean_ref[...] = tsum

    @pl.when(t > 0)
    def _():
        max_ref[...] = jnp.maximum(max_ref[...], tmax)
        mean_ref[...] = mean_ref[...] + tsum

    @pl.when(t == pl.num_programs(1) - 1)
    def _():
        mean_ref[...] = mean_ref[...] * (1.0 / npts)


def head(x1, x2, x3, x4, w5, scale, shift, *, tn=DEFAULT_TQ):
    # xi: (B, Ci, N) f32, w5: (Cout5, C1+C2+C3+C4)
    B, C1, N = x1.shape
    C2, C3, C4 = x2.shape[1], x3.shape[1], x4.shape[1]
    Cout = w5.shape[0]
    assert w5.shape[1] == C1 + C2 + C3 + C4
    assert N % tn == 0

    w5 = w5.astype(jnp.bfloat16)
    w5a = w5[:, :C1]
    w5b = w5[:, C1:C1 + C2]
    w5c = w5[:, C1 + C2:C1 + C2 + C3]
    w5d = w5[:, C1 + C2 + C3:]
    kernel = functools.partial(_head_kernel, float(N))

    def xspec(c):
        return pl.BlockSpec((pl.Squeezed(), c, tn), lambda b, t: (b, 0, t))

    def wspec(c):
        return pl.BlockSpec((Cout, c), lambda b, t: (0, 0))

    hmax, hmean = pl.pallas_call(
        kernel,
        out_shape=(jax.ShapeDtypeStruct((B, Cout, 1), jnp.float32),
                   jax.ShapeDtypeStruct((B, Cout, 1), jnp.float32)),
        grid=(B, N // tn),
        in_specs=[xspec(C1), xspec(C2), xspec(C3), xspec(C4),
                  wspec(C1), wspec(C2), wspec(C3), wspec(C4),
                  pl.BlockSpec((Cout, 1), lambda b, t: (0, 0)),
                  pl.BlockSpec((Cout, 1), lambda b, t: (0, 0))],
        out_specs=(pl.BlockSpec((pl.Squeezed(), Cout, 1), lambda b, t: (b, 0, 0)),
                   pl.BlockSpec((pl.Squeezed(), Cout, 1), lambda b, t: (b, 0, 0))),
        compiler_params=pltpu.CompilerParams(
            dimension_semantics=("parallel", "arbitrary"),  # N axis is a reduction
            vmem_limit_bytes=VMEM_LIMIT),
    )(x1, x2, x3, x4, w5a, w5b, w5c, w5d,
      scale.reshape(Cout, 1), shift.reshape(Cout, 1))
    return hmax[:, :, 0], hmean[:, :, 0]


# ----------------------------------------------------------------------------
# Parameters (deterministic, synthetic).  Weights stored (Cout, Cin) channels-first.
# ----------------------------------------------------------------------------
def fold_bn(gamma, beta, mean, var, eps=1e-5):
    scale = gamma / jnp.sqrt(var + eps)
    shift = beta - mean * scale
    return scale, shift


def init_params(key, hide=64, out_size=128, num_dims=3):
    c16, c8, c4 = hide // 16, hide // 8, hide // 4
    c_out5 = out_size // 2
    ks = jax.random.split(key, 32)

    def w(i, cout, cin):
        return 0.1 * jax.random.normal(ks[i], (cout, cin), jnp.float32)

    def bn(i, c):
        g = 1.0 + 0.1 * jax.random.normal(ks[i], (c,), jnp.float32)
        b = 0.1 * jax.random.normal(ks[i + 1], (c,), jnp.float32)
        m = 0.1 * jax.random.normal(ks[i + 2], (c,), jnp.float32)
        v = 1.0 + 0.5 * jax.random.uniform(ks[i + 3], (c,), jnp.float32)
        return fold_bn(g, b, m, v)

    return dict(
        w1=w(0, c16, 2 * num_dims),            # conv1: 2*num_dims -> hide/16
        w2=w(1, c16, 2 * c16),                 # conv2
        w3=w(2, c8, 2 * c16),                  # conv3
        w4=w(3, c4, 2 * c8),                   # conv4
        w5=w(4, c_out5, c16 + c16 + c8 + c4),  # conv5 (1d)
        wres1=w(5, c16, c16),
        wres2=w(6, c8, c16),
        wres3=w(7, c4, c8),
        bn1=bn(8, c16), bn2=bn(12, c16), bn3=bn(16, c8),
        bn4=bn(20, c4), bn5=bn(24, c_out5),
    )


# ----------------------------------------------------------------------------
# Full forward (kernels + glue).  use_SElayer=False branch of the torch module.
# ----------------------------------------------------------------------------
def edge_conv_res_feat(x, params, k=8, tq=DEFAULT_TQ, idxs=None,
                       return_idx=False, gather="auto"):
    # x: (b, num_dims, npoints) — same axis convention as the torch module.
    s1, b1 = params["bn1"]; s2, b2 = params["bn2"]
    s3, b3 = params["bn3"]; s4, b4 = params["bn4"]; s5, b5 = params["bn5"]

    used = []

    def nbr(feat):
        idx = idxs[len(used)] if idxs is not None else knn_idx(feat, k)
        used.append(idx)
        return jnp.transpose(idx, (0, 2, 1))   # (B, k, N) for the kernels

    x1 = edge_block(x,  nbr(x),  params["w1"], s1, b1, tq=tq, gather=gather)
    x2 = edge_block(x1, nbr(x1), params["w2"], s2, b2, params["wres1"],
                    tq=tq, gather=gather)
    x3 = edge_block(x2, nbr(x2), params["w3"], s3, b3, params["wres2"],
                    tq=tq, gather=gather)
    x4 = edge_block(x3, nbr(x3), params["w4"], s4, b4, params["wres3"],
                    tq=tq, gather=gather)

    # concat + conv5 fused inside the head kernel (no (B, hide/2, N) HBM round trip)
    hmax, hmean = head(x1, x2, x3, x4, params["w5"], s5, b5, tn=tq)
    out = jnp.concatenate([hmax, hmean], axis=1)       # (B, output_size)
    return (out, used) if return_idx else out


# ----------------------------------------------------------------------------
# Pure-JAX reference for verification
# ----------------------------------------------------------------------------
def ref_forward(x, params, k=8, idxs=None):
    s1, b1 = params["bn1"]; s2, b2 = params["bn2"]
    s3, b3 = params["bn3"]; s4, b4 = params["bn4"]; s5, b5 = params["bn5"]
    used = [0]

    def blk(xc, w, scale, shift, wres=None):
        xt = jnp.transpose(xc, (0, 2, 1))                            # (B, N, C)
        idx = idxs[used[0]] if idxs is not None else knn_idx(xc, k)
        used[0] += 1
        nb = jax.vmap(lambda xb, ib: xb[ib])(xt, idx)                # (B, N, k, C)
        diff = nb - xt[:, :, None, :]
        feat = jnp.concatenate(
            [diff, jnp.broadcast_to(xt[:, :, None, :], diff.shape)], axis=-1)
        h = jnp.einsum("bnkc,dc->bnkd", feat, w)
        h = h * scale + shift
        h = jnp.where(h > 0, h, 0.2 * h)
        out = h.max(axis=2)                                          # (B, N, Cout)
        if wres is not None:
            out = out + jnp.einsum("bnc,dc->bnd", xt, wres)
        return jnp.transpose(out, (0, 2, 1))                         # (B, Cout, N)

    x1 = blk(x, params["w1"], s1, b1)
    x2 = blk(x1, params["w2"], s2, b2, params["wres1"])
    x3 = blk(x2, params["w3"], s3, b3, params["wres2"])
    x4 = blk(x3, params["w4"], s4, b4, params["wres3"])
    xcat = jnp.concatenate([x1, x2, x3, x4], axis=1)                 # (B, Ccat, N)
    h = jnp.einsum("bcn,dc->bdn", xcat, params["w5"])
    h = h * s5[None, :, None] + b5[None, :, None]
    h = jnp.where(h > 0, h, 0.2 * h)
    return jnp.concatenate([h.max(axis=-1), h.mean(axis=-1)], axis=1)


if __name__ == "__main__":
    B, C, N, K = 2, 3, 256, 8         # batch, num_dims, npoints, neighbors
    HIDE, OUT, TQ = 64, 128, 128      # hide_size, output_size (scaled-down), point tile

    key = jax.random.PRNGKey(0)
    kx, kp = jax.random.split(key)
    x = jax.random.normal(kx, (B, C, N), jnp.float32)
    params = init_params(kp, hide=HIDE, out_size=OUT, num_dims=C)

    # Default (auto) path: one-hot gather with per-batch p scratch (N < 1024).
    out, idxs = edge_conv_res_feat(x, params, k=K, tq=TQ, return_idx=True)
    out = jax.block_until_ready(out)
    assert out.shape == (B, OUT)

    # Reference uses the SAME neighbor indices as the kernel path so near-tie
    # neighbor flips (bf16 knn vs f32) cannot spuriously amplify benign rounding.
    ref = ref_forward(x, params, k=K, idxs=idxs)
    np.testing.assert_allclose(np.asarray(out), np.asarray(ref), rtol=1e-2, atol=1e-2)

    # Also exercise the real-gather edge-block path (the production large-N variant).
    out_g = edge_conv_res_feat(x, params, k=K, tq=TQ, idxs=idxs, gather="take")
    out_g = jax.block_until_ready(out_g)
    np.testing.assert_allclose(np.asarray(out_g), np.asarray(ref), rtol=1e-2, atol=1e-2)

    print("KERNEL_OK")
</pallas_src>

<mosaic_0001>
module attributes {stable_mosaic.version = 11 : i64} {
  func.func @_edge_onehot_kernel(%arg0: i32, %arg1: i32, %arg2: memref<1x8x128xi32, #tpu.memory_space<vmem>>, %arg3: memref<1x3x256xf32, #tpu.memory_space<vmem>>, %arg4: memref<4x3xf32, #tpu.memory_space<vmem>>, %arg5: memref<4x3xf32, #tpu.memory_space<vmem>>, %arg6: memref<4x1xf32, #tpu.memory_space<vmem>>, %arg7: memref<4x1xf32, #tpu.memory_space<vmem>>, %arg8: memref<1x4x128xf32, #tpu.memory_space<vmem>>, %arg9: memref<4x256xbf16, #tpu.memory_space<vmem>>) attributes {dimension_semantics = [#tpu.dimension_semantics<parallel>, #tpu.dimension_semantics<arbitrary>], iteration_bounds = array<i64: 2, 2>, scalar_prefetch = 0 : i64, scratch_operands = 1 : i64, tpu.core_type = #tpu.core_type<tc>, window_params = [{transform_indices = @transform_0, window_bounds = array<i64: 1, 8, 128>}, {transform_indices = @transform_1, window_bounds = array<i64: 1, 3, 256>}, {pipeline_mode = #tpu.pipeline_mode<synchronous>, transform_indices = @transform_2, window_bounds = array<i64: 4, 3>}, {pipeline_mode = #tpu.pipeline_mode<synchronous>, transform_indices = @transform_3, window_bounds = array<i64: 4, 3>}, {pipeline_mode = #tpu.pipeline_mode<synchronous>, transform_indices = @transform_4, window_bounds = array<i64: 4, 1>}, {pipeline_mode = #tpu.pipeline_mode<synchronous>, transform_indices = @transform_5, window_bounds = array<i64: 4, 1>}, {transform_indices = @transform_6, window_bounds = array<i64: 1, 4, 128>}]} {
    %c128_i32 = arith.constant 128 : i32
    %0 = arith.muli %arg1, %c128_i32 : i32
    %1 = tpu.assume_multiple %0, 128 : i32
    %c0_i32 = arith.constant 0 : i32
    %2 = arith.cmpi eq, %arg1, %c0_i32 : i32
    %3 = arith.extui %2 : i1 to i32
    %c0_i32_0 = arith.constant 0 : i32
    %4 = arith.cmpi ne, %3, %c0_i32_0 : i32
    scf.if %4 {
      %c0_18 = arith.constant 0 : index
      %c0_19 = arith.constant 0 : index
      %101 = vector.load %arg4[%c0_18, %c0_19] : memref<4x3xf32, #tpu.memory_space<vmem>>, vector<4x3xf32>
      %c0_20 = arith.constant 0 : index
      %c0_21 = arith.constant 0 : index
      %c0_22 = arith.constant 0 : index
      %102 = vector.load %arg3[%c0_20, %c0_21, %c0_22] : memref<1x3x256xf32, #tpu.memory_space<vmem>>, vector<1x3x256xf32>
      %103 = vector.shape_cast %102 : vector<1x3x256xf32> to vector<3x256xf32>
      %cst_23 = arith.constant dense<0.000000e+00> : vector<4x256xf32>
      %104 = tpu.matmul %101, %103, %cst_23 {dimension_numbers = #tpu.dot_dimension_numbers<[1], [0], [0], [1], [0, 0, 1, 1], [], []>} : vector<4x3xf32>, vector<3x256xf32>, vector<4x256xf32> -> vector<4x256xf32>
      %105 = arith.truncf %104 : vector<4x256xf32> to vector<4x256xbf16>
      %c0_24 = arith.constant 0 : index
      %c0_25 = arith.constant 0 : index
      %106 = vector.load %arg9[%c0_24, %c0_25] : memref<4x256xbf16, #tpu.memory_space<vmem>>, vector<4x256xbf16>
      tpu.vector_store %arg9[%c0_24, %c0_25], %105 {strides = array<i32>} : memref<4x256xbf16, #tpu.memory_space<vmem>>, vector<4x256xbf16>,
    } else {
    }
    %c0 = arith.constant 0 : index
    %c0_1 = arith.constant 0 : index
    %5 = arith.index_cast %1 : i32 to index
    %6 = vector.load %arg3[%c0, %c0_1, %5] : memref<1x3x256xf32, #tpu.memory_space<vmem>>, vector<1x3x128xf32>
    %7 = vector.shape_cast %6 : vector<1x3x128xf32> to vector<3x128xf32>
    %c0_2 = arith.constant 0 : index
    %c0_3 = arith.constant 0 : index
    %8 = vector.load %arg5[%c0_2, %c0_3] : memref<4x3xf32, #tpu.memory_space<vmem>>, vector<4x3xf32>
    %cst = arith.constant dense<0.000000e+00> : vector<4x128xf32>
    %9 = tpu.matmul %8, %7, %cst {dimension_numbers = #tpu.dot_dimension_numbers<[1], [0], [0], [1], [0, 0, 1, 1], [], []>} : vector<4x3xf32>, vector<3x128xf32>, vector<4x128xf32> -> vector<4x128xf32>
    %c0_4 = arith.constant 0 : index
    %c0_5 = arith.constant 0 : index
    %10 = vector.load %arg6[%c0_4, %c0_5] : memref<4x1xf32, #tpu.memory_space<vmem>>, vector<4x1xf32>
    %c0_6 = arith.constant 0 : index
    %c0_7 = arith.constant 0 : index
    %11 = vector.load %arg7[%c0_6, %c0_7] : memref<4x1xf32, #tpu.memory_space<vmem>>, vector<4x1xf32>
    %c0_8 = arith.constant 0 : index
    %c0_9 = arith.constant 0 : index
    %c0_10 = arith.constant 0 : index
    %12 = vector.load %arg2[%c0_8, %c0_9, %c0_10] : memref<1x8x128xi32, #tpu.memory_space<vmem>>, vector<1x8x128xi32>
    %13 = vector.shape_cast %12 : vector<1x8x128xi32> to vector<8x128xi32>
    %14 = tpu.iota {dimensions = array<i32: 0>} : vector<256x1xi32>
    %15 = vector.extract_strided_slice %13 {offsets = [0, 0], sizes = [1, 128], strides = [1, 1]} : vector<8x128xi32> to vector<1x128xi32>
    %16 = vector.broadcast %14 : vector<256x1xi32> to vector<256x128xi32>
    %17 = vector.broadcast %15 : vector<1x128xi32> to vector<256x128xi32>
    %18 = arith.cmpi eq, %16, %17 : vector<256x128xi32>
    %19 = arith.extui %18 : vector<256x128xi1> to vector<256x128xi32>
    %20 = arith.sitofp %19 : vector<256x128xi32> to vector<256x128xf32>
    %21 = arith.truncf %20 : vector<256x128xf32> to vector<256x128xbf16>
    %22 = vector.extract_strided_slice %13 {offsets = [1, 0], sizes = [1, 128], strides = [1, 1]} : vector<8x128xi32> to vector<1x128xi32>
    %23 = vector.broadcast %14 : vector<256x1xi32> to vector<256x128xi32>
    %24 = vector.broadcast %22 : vector<1x128xi32> to vector<256x128xi32>
    %25 = arith.cmpi eq, %23, %24 : vector<256x128xi32>
    %26 = arith.extui %25 : vector<256x128xi1> to vector<256x128xi32>
    %27 = arith.sitofp %26 : vector<256x128xi32> to vector<256x128xf32>
    %28 = arith.truncf %27 : vector<256x128xf32> to vector<256x128xbf16>
    %29 = vector.extract_strided_slice %13 {offsets = [2, 0], sizes = [1, 128], strides = [1, 1]} : vector<8x128xi32> to vector<1x128xi32>
    %30 = vector.broadcast %14 : vector<256x1xi32> to vector<256x128xi32>
    %31 = vector.broadcast %29 : vector<1x128xi32> to vector<256x128xi32>
    %32 = arith.cmpi eq, %30, %31 : vector<256x128xi32>
    %33 = arith.extui %32 : vector<256x128xi1> to vector<256x128xi32>
    %34 = arith.sitofp %33 : vector<256x128xi32> to vector<256x128xf32>
    %35 = arith.truncf %34 : vector<256x128xf32> to vector<256x128xbf16>
    %36 = vector.extract_strided_slice %13 {offsets = [3, 0], sizes = [1, 128], strides = [1, 1]} : vector<8x128xi32> to vector<1x128xi32>
    %37 = vector.broadcast %14 : vector<256x1xi32> to vector<256x128xi32>
    %38 = vector.broadcast %36 : vector<1x128xi32> to vector<256x128xi32>
    %39 = arith.cmpi eq, %37, %38 : vector<256x128xi32>
    %40 = arith.extui %39 : vector<256x128xi1> to vector<256x128xi32>
    %41 = arith.sitofp %40 : vector<256x128xi32> to vector<256x128xf32>
    %42 = arith.truncf %41 : vector<256x128xf32> to vector<256x128xbf16>
    %43 = vector.extract_strided_slice %13 {offsets = [4, 0], sizes = [1, 128], strides = [1, 1]} : vector<8x128xi32> to vector<1x128xi32>
    %44 = vector.broadcast %14 : vector<256x1xi32> to vector<256x128xi32>
    %45 = vector.broadcast %43 : vector<1x128xi32> to vector<256x128xi32>
    %46 = arith.cmpi eq, %44, %45 : vector<256x128xi32>
    %47 = arith.extui %46 : vector<256x128xi1> to vector<256x128xi32>
    %48 = arith.sitofp %47 : vector<256x128xi32> to vector<256x128xf32>
    %49 = arith.truncf %48 : vector<256x128xf32> to vector<256x128xbf16>
    %50 = vector.extract_strided_slice %13 {offsets = [5, 0], sizes = [1, 128], strides = [1, 1]} : vector<8x128xi32> to vector<1x128xi32>
    %51 = vector.broadcast %14 : vector<256x1xi32> to vector<256x128xi32>
    %52 = vector.broadcast %50 : vector<1x128xi32> to vector<256x128xi32>
    %53 = arith.cmpi eq, %51, %52 : vector<256x128xi32>
    %54 = arith.extui %53 : vector<256x128xi1> to vector<256x128xi32>
    %55 = arith.sitofp %54 : vector<256x128xi32> to vector<256x128xf32>
    %56 = arith.truncf %55 : vector<256x128xf32> to vector<256x128xbf16>
    %57 = vector.extract_strided_slice %13 {offsets = [6, 0], sizes = [1, 128], strides = [1, 1]} : vector<8x128xi32> to vector<1x128xi32>
    %58 = vector.broadcast %14 : vector<256x1xi32> to vector<256x128xi32>
    %59 = vector.broadcast %57 : vector<1x128xi32> to vector<256x128xi32>
    %60 = arith.cmpi eq, %58, %59 : vector<256x128xi32>
    %61 = arith.extui %60 : vector<256x128xi1> to vector<256x128xi32>
    %62 = arith.sitofp %61 : vector<256x128xi32> to vector<256x128xf32>
    %63 = arith.truncf %62 : vector<256x128xf32> to vector<256x128xbf16>
    %64 = vector.extract_strided_slice %13 {offsets = [7, 0], sizes = [1, 128], strides = [1, 1]} : vector<8x128xi32> to vector<1x128xi32>
    %65 = vector.broadcast %14 : vector<256x1xi32> to vector<256x128xi32>
    %66 = vector.broadcast %64 : vector<1x128xi32> to vector<256x128xi32>
    %67 = arith.cmpi eq, %65, %66 : vector<256x128xi32>
    %68 = arith.extui %67 : vector<256x128xi1> to vector<256x128xi32>
    %69 = arith.sitofp %68 : vector<256x128xi32> to vector<256x128xf32>
    %70 = arith.truncf %69 : vector<256x128xf32> to vector<256x128xbf16>
    %71 = tpu.concatenate %21, %28, %35, %42, %49, %56, %63, %70 in 1 : vector<256x128xbf16>, vector<256x128xbf16>, vector<256x128xbf16>, vector<256x128xbf16>, vector<256x128xbf16>, vector<256x128xbf16>, vector<256x128xbf16>, vector<256x128xbf16> -> vector<256x1024xbf16>
    %c0_11 = arith.constant 0 : index
    %c0_12 = arith.constant 0 : index
    %72 = vector.load %arg9[%c0_11, %c0_12] : memref<4x256xbf16, #tpu.memory_space<vmem>>, vector<4x256xbf16>
    %cst_13 = arith.constant dense<0.000000e+00> : vector<4x1024xf32>
    %73 = tpu.matmul %72, %71, %cst_13 {dimension_numbers = #tpu.dot_dimension_numbers<[1], [0], [0], [1], [0, 0, 1, 1], [], []>} : vector<4x256xbf16>, vector<256x1024xbf16>, vector<4x1024xf32> -> vector<4x1024xf32>
    %74 = tpu.concatenate %9, %9, %9, %9, %9, %9, %9, %9 in 1 : vector<4x128xf32>, vector<4x128xf32>, vector<4x128xf32>, vector<4x128xf32>, vector<4x128xf32>, vector<4x128xf32>, vector<4x128xf32>, vector<4x128xf32> -> vector<4x1024xf32>
    %75 = arith.addf %73, %74 : vector<4x1024xf32>
    %76 = vector.broadcast %10 : vector<4x1xf32> to vector<4x1024xf32>
    %77 = arith.mulf %75, %76 : vector<4x1024xf32>
    %78 = vector.broadcast %11 : vector<4x1xf32> to vector<4x1024xf32>
    %79 = arith.addf %77, %78 : vector<4x1024xf32>
    %cst_14 = arith.constant 2.000000e-01 : f32
    %80 = vector.broadcast %cst_14 : f32 to vector<4x1024xf32>
    %81 = arith.mulf %80, %79 : vector<4x1024xf32>
    %82 = arith.maximumf %79, %81 : vector<4x1024xf32>
    %83 = vector.extract_strided_slice %82 {offsets = [0, 0], sizes = [4, 128], strides = [1, 1]} : vector<4x1024xf32> to vector<4x128xf32>
    %84 = vector.extract_strided_slice %82 {offsets = [0, 128], sizes = [4, 128], strides = [1, 1]} : vector<4x1024xf32> to vector<4x128xf32>
    %85 = arith.maximumf %83, %84 : vector<4x128xf32>
    %86 = vector.extract_strided_slice %82 {offsets = [0, 256], sizes = [4, 128], strides = [1, 1]} : vector<4x1024xf32> to vector<4x128xf32>
    %87 = arith.maximumf %85, %86 : vector<4x128xf32>
    %88 = vector.extract_strided_slice %82 {offsets = [0, 384], sizes = [4, 128], strides = [1, 1]} : vector<4x1024xf32> to vector<4x128xf32>
    %89 = arith.maximumf %87, %88 : vector<4x128xf32>
    %90 = vector.extract_strided_slice %82 {offsets = [0, 512], sizes = [4, 128], strides = [1, 1]} : vector<4x1024xf32> to vector<4x128xf32>
    %91 = arith.maximumf %89, %90 : vector<4x128xf32>
    %92 = vector.extract_strided_slice %82 {offsets = [0, 640], sizes = [4, 128], strides = [1, 1]} : vector<4x1024xf32> to vector<4x128xf32>
    %93 = arith.maximumf %91, %92 : vector<4x128xf32>
    %94 = vector.extract_strided_slice %82 {offsets = [0, 768], sizes = [4, 128], strides = [1, 1]} : vector<4x1024xf32> to vector<4x128xf32>
    %95 = arith.maximumf %93, %94 : vector<4x128xf32>
    %96 = vector.extract_strided_slice %82 {offsets = [0, 896], sizes = [4, 128], strides = [1, 1]} : vector<4x1024xf32> to vector<4x128xf32>
    %97 = arith.maximumf %95, %96 : vector<4x128xf32>
    %c0_15 = arith.constant 0 : index
    %c0_16 = arith.constant 0 : index
    %c0_17 = arith.constant 0 : index
    %98 = vector.load %arg8[%c0_15, %c0_16, %c0_17] : memref<1x4x128xf32, #tpu.memory_space<vmem>>, vector<1x4x128xf32>
    %99 = vector.shape_cast %98 : vector<1x4x128xf32> to vector<4x128xf32>
    %100 = vector.shape_cast %97 : vector<4x128xf32> to vector<1x4x128xf32>
    tpu.vector_store %arg8[%c0_15, %c0_16, %c0_17], %100 {strides = array<i32>} : memref<1x4x128xf32, #tpu.memory_space<vmem>>, vector<1x4x128xf32>,
    return
  }
  func.func @transform_0(%arg0: i32, %arg1: i32) -> (i32, i32, i32) {
    %c0_i32 = arith.constant 0 : i32
    %c0_i32_0 = arith.constant 0 : i32
    return %arg0, %c0_i32, %arg1 : i32, i32, i32
  }
  func.func @transform_1(%arg0: i32, %arg1: i32) -> (i32, i32, i32) {
    %c0_i32 = arith.constant 0 : i32
    %c0_i32_0 = arith.constant 0 : i32
    %c0_i32_1 = arith.constant 0 : i32
    return %arg0, %c0_i32, %c0_i32_0 : i32, i32, i32
  }
  func.func @transform_2(%arg0: i32, %arg1: i32) -> (i32, i32) {
    %c0_i32 = arith.constant 0 : i32
    %c0_i32_0 = arith.constant 0 : i32
    %c0_i32_1 = arith.constant 0 : i32
    return %c0_i32, %c0_i32_0 : i32, i32
  }
  func.func @transform_3(%arg0: i32, %arg1: i32) -> (i32, i32) {
    %c0_i32 = arith.constant 0 : i32
    %c0_i32_0 = arith.constant 0 : i32
    %c0_i32_1 = arith.constant 0 : i32
    return %c0_i32, %c0_i32_0 : i32, i32
  }
  func.func @transform_4(%arg0: i32, %arg1: i32) -> (i32, i32) {
    %c0_i32 = arith.constant 0 : i32
    %c0_i32_0 = arith.constant 0 : i32
    %c0_i32_1 = arith.constant 0 : i32
    return %c0_i32, %c0_i32_0 : i32, i32
  }
  func.func @transform_5(%arg0: i32, %arg1: i32) -> (i32, i32) {
    %c0_i32 = arith.constant 0 : i32
    %c0_i32_0 = arith.constant 0 : i32
    %c0_i32_1 = arith.constant 0 : i32
    return %c0_i32, %c0_i32_0 : i32, i32
  }
  func.func @transform_6(%arg0: i32, %arg1: i32) -> (i32, i32, i32) {
    %c0_i32 = arith.constant 0 : i32
    %c0_i32_0 = arith.constant 0 : i32
    return %arg0, %c0_i32, %arg1 : i32, i32, i32
  }
}

</mosaic_0001>

<bundles_post_ra>
// kernel: tpu_custom_call.1
= control target key start
LH: loop header
LB: loop body
LE: loop exit
PB: predicated region body
PF: predicated region fallthrough
CT: control target
= control target key end

     0   :  { %11 = vsyncpa [#allocation4], 0  ;;  %s4098_s0 = inlined_call_operand.vmem [shape: s32[2,8,256], index: 0, kind: input, shape index: {}]   ;;  %s4099_s1 = inlined_call_operand.vmem [shape: f32[2,3,256], index: 1, kind: input, shape index: {}]   ;;  %s4100_s2 = inlined_call_operand.vmem [shape: f32[4,3], index: 2, kind: input, shape index: {}]   ;;  %s4101_s3 = inlined_call_operand.vmem [shape: f32[4,3], index: 3, kind: input, shape index: {}]   ;;  %s4102_s4 = inlined_call_operand.vmem [shape: f32[4,1], index: 4, kind: input, shape index: {}]   ;;  %s4103_s5 = inlined_call_operand.vmem [shape: f32[4,1], index: 5, kind: input, shape index: {}]   ;;  %s4104_s6 = inlined_call_operand.hbm [shape: f32[2,4,256], index: 6, kind: output, shape index: {}]  }
   0x1   :  { %13 = vsyncpa [#allocation4 + $0x1], 0  ;;  %s2540_s21 = smov 0   ;;  %s2542_s22 = smov 0  }
   0x2   :  { %s2544_s23 = smov 0   ;;  %s2546_s24 = smov 0  }
   0x3   :  { %s2548_s25 = smov 0   ;;  %s2550_s26 = smov 0  }
   0x4   :  { %s2552_s27 = smov 0   ;;  %s2554_s28 = smov 0  }
   0x5 LB: > { %4110 = sst [smem:[#allocation6_spill]] %s2489_s26  ;;  %s1780_s29 = sadd.s32 4294967295, %s2497_s28   ;;  %s2497_s28 = sphi %s2554_s28, %s19_s28   ;;  %s2493_s27 = sphi %s2552_s27, %s4277_s27   ;;  %s2489_s26 = sphi %s2550_s26, %s4276_s26   ;;  %s2485_s25 = sphi %s2548_s25, %s4275_s25   ;;  %s2481_s24 = sphi %s2546_s24, %s4274_s24   ;;  %s2477_s23 = sphi %s2544_s23, %s4280_s23   ;;  %s2473_s22 = sphi %s2542_s22, %s4279_s22   ;;  %s2469_s21 = sphi %s2540_s21, %s4278_s21  }
   0x6   : > { %4111 = sst [smem:[#allocation7_spill]] %s2493_s27  ;;  %s1781_s30 = sadd.s32 4294967294, %s2497_s28  }
   0x7   : > { %s28_s7 = sadd.s32 1, %s2489_s26  ;;  %s31_s8 = sadd.s32 1, %s2493_s27 }
   0x8   : > { %p29_p0 = scmp.ge.s32.totalorder %s28_s7, 2  ;;  %p188_p1 = scmp.ne.s32.totalorder %s2477_s23, %s2473_s22 }
   0x9   : > { %p189_p2 = scmp.eq.s32.totalorder %s1780_s29, 3  ;;  %p194_p5 = scmp.ne.s32.totalorder %s2473_s22, %s2469_s21 }
   0xa   : > { %s4282_s7 = smov (%p29_p0, %s28_s7), 0  ;;  %s4284_s8 = smov (!%p29_p0, %s31_s8), %s2493_s27 }
   0xb   : > { %4112 = sst [smem:[#allocation8_spill]] %s4282_s7  ;;  %s174_s9 = ssub.s32 %s2489_s26, %s4282_s7 }
   0xc   : > { %p2591_p3 = por %p189_p2, %p188_p1  ;;  %p33_p4 = scmp.ge.s32.totalorder %s4284_s8, 2 }
   0xd   : > { %p195_p6 = scmp.eq.s32.totalorder %s1781_s30, 3  ;;  %p1784_p7 = scmp.ge.s32.totalorder %s2497_s28, 1 }
   0xe   : > { %s4286_s8 = smov (%p33_p4, %s4284_s8), 0  ;;  %p244_p9 = scmp.lt.s32.totalorder %s2497_s28, 5 }
   0xf   : > { %4114 = sst [smem:[#allocation9_spill]] %s4286_s8  ;;  %p2600_p8 = por %p195_p6, %p194_p5 }
  0x10   : > { %s173_s12 = ssub.s32 %s2493_s27, %s4286_s8  ;;  %s178_s13 = sadd.s32 1, %s2477_s23 }
  0x11   : > { %s175_s14 = sor.u32 %s174_s9, %s173_s12  ;;  %p245_p10 = pnand %p1784_p7, %p244_p9 }
  0x12   : > { %p176_p11 = scmp.eq.s32.totalorder %s175_s14, 0  ;;  %s4109_s16 = sand.u32 (!%p245_p10), 1, %s2473_s22  }
  0x13   : > { %248 = sbr.rel (%p245_p10) target bundleno = 599 (0x257), region = 44  ;;  %p282_p12 = scmp.lt.s32.totalorder (!%p245_p10), %s2485_s25, 1 }
  0x14   : > { %s2609_s15 = scalar_select %p176_p11, %s2477_s23, %s178_s13  }
  0x15   : > { %s2615_s17 = sshll.u32 (!%p245_p10), %s4109_s16, 2  ;;  %p284_p13 = scmp.lt.s32.totalorder (!%p245_p10), %s2481_s24, 1 }
  0x16   : > { %s1790_s18 = sshll.u32 (!%p245_p10), %s2481_s24, 7  ;;  %s281_s16 = scalar_lea.vmem (!%p245_p10), [#allocation3], %s2615_s17 }
  0x17   : > { %p1791_p0 = scmp.ne.s32.totalorder (!%p245_p10), %s2481_s24, 0 }
  0x18   : > { %s283_s19 = scalar_select %p282_p12, %s2485_s25, 1 }
  0x19   : > { %s285_s20 = scalar_select %p284_p13, %s2481_s24, 1 }
  0x1a   : > { %s1786_s29 = sshll.u32 %s283_s19, 1  ;;  %s2318_s30 = sshll.u32 %s283_s19, 3 }
  0x1b   : > { %s287_s9 = sadd.s32 %s1786_s29, %s285_s20  ;;  %s2624_s14 = scalar_lea.vmem %s4099_s1, %s2318_s30 }
  0x1c   : > { %s1787_s8 = sshll.u32 %s287_s9, 3  ;;  %299 = sbr.rel (%p1791_p0) target bundleno = 236 (0xec), region = 48 }
  0x1d   : > { %s2629_s26 = scalar_lea.vmem %s4098_s0, %s1787_s8 }
  0x21   : > { %v301_v0 = vld [vmem:[%s2624_s14] sm:$0x77]  ;;  %vm308_vm0 = vcmask 1042432   ;;  %v2499_v2 = vmov 0.0   ;;  %vm304_vm1 = vcmask 23552  }
  0x22   : > { %v303_v1 = vcombine.high %v301_v0, %v301_v0  ;;  %377 = vmatprep.mubr.f32.mxu0 %v2499_v2  ;;  %v300_v3 = vld [vmem:[%s4100_s2] sm:$0xf] }
  0x24   : > { %1792 = vmatprep.subr.msk.mxu0 %vm308_vm0, %v303_v1 }
  0x25   : > { %1793 = vmatpush1.msk.msra.mxu0 %vm308_vm0, %v301_v0 }
  0x26   : > { %1794 = vmatmul.mubr.msk.f32.vlgmr.msra.gmra.mxu0 %vm304_vm1, %v300_v3 }
  0xe6   : > { %v379_v4 = vpop.f32.mrf.mxu0 }
  0xe8   : > { %v381_v5 = vpop.f32.mrf.mxu0 }
  0xe9   : > { %v1795_v6 = vpack.c.bf16 %v381_v5, %v379_v4 }
  0xeb   : > { %1796 = vst.sshfl [vmem:[#allocation2] sm:$0x33 pattern:$0x76325410] %v1795_v6 }
  0xec PF: > { %s398_s27 = sshra.s32 %s1790_s18, 7  ;;  %v485_v7 = vlaneseq  ;;  %v2500_v8 = vmov 0.0   ;;  %vm408_vm2 = vcmask 1042432   ;;  %vm2501_vm3 = vmmov 0   ;;  %v403_v9 = vld [vmem:[%s4101_s3] sm:$0xf] }
  0xed   : > { %2321 = vmatprep.subr.mxu0 %v2500_v8  ;;  %s1797_s7 = sshll.u32 %s398_s27, 2  ;;  %2323 = vmatprep.mubr.msk.f32.mxu0 %vm2501_vm3, %v2500_v8  ;;  %vm404_vm4 = vcmask 23552   ;;  %v2646_v13 = vld [vmem:[%s2629_s26] sm:$0xff]  ;;  %v2502_v27 = vmov 1.0|1.0   ;;  %v2503_v0 = vmov 0  }
  0xee   : > { %s401_s30 = scalar_lea.vmem %s2624_s14, %s1797_s7  ;;  %v2641_v10 = vshrl.u32 %v485_v7, 7  ;;  %v482_v63 = vld [vmem:[%s4102_s4] sm:$0xf]  ;;  %2403 = vset.pattern.permute.xlu0 %v2503_v0  ;;  %s2314_s13 = sshll.u32 %s2485_s25, 1 }
  0xef   : > { %v402_v12 = vld [vmem:[%s401_s30] sm:$0x7]  ;;  %1624 = vperm.xlu0 %2403, %v482_v63   ;;  %s1684_s14 = sadd.s32 %s2481_s24, %s2314_s13  ;;  %s1688_s20 = sshll.u32 %s281_s16, 4  ;;  %s1689_s20 = int_to_ptr.vmem [resolvable:$true] %s1688_s20 }
  0xf0   : > { %2322 = vmatpush3.msk.msra.mxu0 %vm408_vm2, %v402_v12  ;;  %v2653_v15 = vadd.s32 112, %v2641_v10  ;;  %v2656_v16 = vadd.s32 120, %v2641_v10  ;;  %v636_v17 = vsub.s32 1, %v2641_v10  ;;  %v868_v18 = vsub.s32 3, %v2641_v10  ;;  %v483_v1 = vld [vmem:[%s4103_s5] sm:$0xf] }
  0xf1   : > { %2324 = vmatmul.mubr.msk.f32.vlgmr.msra.gmra.mxu0 %vm404_vm4, %v403_v9  ;;  %v520_v19 = vsub.s32 0, %v2641_v10  ;;  %v752_v20 = vsub.s32 2, %v2641_v10  ;;  %v2670_v23 = vadd.s32 96, %v2641_v10  ;;  %v2673_v24 = vadd.s32 104, %v2641_v10  ;;  %s2315_s19 = sshll.u32 %s1684_s14, 6  ;;  %s4273_s8 = sand.u32 1, %s2473_s22  }
  0xf2   : > { %v2643_v11 = vld.sshfl [vmem:[#allocation2] sm:$0x33 pattern:$0x76325410]  ;;  %v2664_v21 = vrot.slane %v2646_v13, %v636_v17  ;;  %v2667_v22 = vrot.slane %v2646_v13, %v868_v18  ;;  %v2704_v28 = vadd.s32 80, %v2641_v10  ;;  %v2707_v29 = vadd.s32 88, %v2641_v10  ;;  %s1686_s7 = scalar_lea.hbm %s4104_s6, %s2315_s19 }
  0xf3   : > { %v2650_v14 = vcombine.high %v2643_v11, %v2643_v11  ;;  %v2677_v25 = vrot.slane %v2646_v13, %v520_v19  ;;  %v2680_v26 = vrot.slane %v2646_v13, %v752_v20  ;;  %v2730_v30 = vadd.s32 64, %v2641_v10  ;;  %1637 = vperm.xlu0 %2403, %v483_v1   ;;  %v2404_v2 = vld.sshfl [vmem:[#allocation2] sm:$0x33 pattern:$0x76325410]  ;;  %s1673_s29 = scalar_lea.sflag [#allocation4], %s4273_s8 }
  0xf4   : > { %vm652_vm5 = vcmp.eq.s32.totalorder %v2653_v15, %v2664_v21  ;;  %vm653_vm6 = vcmp.eq.s32.totalorder %v2656_v16, %v2664_v21  ;;  %vm884_vm7 = vcmp.eq.s32.totalorder %v2653_v15, %v2667_v22  ;;  %vm885_vm8 = vcmp.eq.s32.totalorder %v2656_v16, %v2667_v22  ;;  %s2405_s30 = scalar_lea.vmem %s1689_s20, 64  ;;  %s2504_s24 = smov [#allocation3]  }
  0xf5   : > { %1490 = vmatprep.mubr.bf16.mxu1 %v2650_v14  ;;  %1531 = vmatprep.mubr.bf16.mxu0 %v2650_v14  ;;  %vm2057_vm9 = vmpackc.low %vm653_vm6, %vm652_vm5  ;;  %vm536_vm10 = vcmp.eq.s32.totalorder %v2653_v15, %v2677_v25  ;;  %vm537_vm11 = vcmp.eq.s32.totalorder %v2656_v16, %v2677_v25  ;;  %vm768_vm12 = vcmp.eq.s32.totalorder %v2653_v15, %v2680_v26  ;;  %v2733_v31 = vadd.s32 72, %v2641_v10  ;;  %p2406_p1 = scmp.ne.s32.totalorder %s1689_s20, %s2405_s30  ;;  %s2409_s26 = sshll.u32 %s2504_s24, 4  ;;  %s2410_s26 = int_to_ptr.vmem [resolvable:$false] %s2409_s26 }
  0xf6   : > { %vm769_vm13 = vcmp.eq.s32.totalorder %v2656_v16, %v2680_v26  ;;  %2058 = vmatprep.subr.msk.bf16.mxu1 %vm2057_vm9, %v2502_v27  ;;  %vm2121_vm14 = vmpackc.low %vm885_vm8, %vm884_vm7  ;;  %vm650_vm15 = vcmp.eq.s32.totalorder %v2670_v23, %v2664_v21  ;;  %vm651_vm0 = vcmp.eq.s32.totalorder %v2673_v24, %v2664_v21  ;;  %vm882_vm2 = vcmp.eq.s32.totalorder %v2670_v23, %v2667_v22  ;;  %s2411_s18 = scalar_lea.vmem %s2410_s26, 128  ;;  %p2412_p5 = scmp.lt.s32.totalorder %s1689_s20, %s2410_s26 }
  0xf7   : > { %2122 = vmatprep.subr.msk.bf16.mxu0 %vm2121_vm14, %v2502_v27  ;;  %vm2059_vm1 = vmpackc.low %vm537_vm11, %vm536_vm10  ;;  %vm883_vm3 = vcmp.eq.s32.totalorder %v2673_v24, %v2667_v22  ;;  %vm534_vm5 = vcmp.eq.s32.totalorder %v2670_v23, %v2677_v25  ;;  %vm535_vm6 = vcmp.eq.s32.totalorder %v2673_v24, %v2677_v25  ;;  %vm766_vm8 = vcmp.eq.s32.totalorder %v2670_v23, %v2680_v26  ;;  %p2407_p2 = pnand %p2406_p1, %p2591_p3  ;;  %p2413_p6 = scmp.lt.s32.totalorder %s2411_s18, %s2405_s30 }
  0xf8   : > { %2060 = vmatpush1.bf16.msk.msra.mxu1 %vm2059_vm1, %v2502_v27  ;;  %vm2123_vm4 = vmpackc.low %vm769_vm13, %vm768_vm12  ;;  %vm767_vm9 = vcmp.eq.s32.totalorder %v2673_v24, %v2680_v26  ;;  %vm648_vm11 = vcmp.eq.s32.totalorder %v2704_v28, %v2664_v21  ;;  %vm649_vm12 = vcmp.eq.s32.totalorder %v2707_v29, %v2664_v21  ;;  %vm880_vm14 = vcmp.eq.s32.totalorder %v2704_v28, %v2667_v22 }
  0xf9   : > { %2124 = vmatpush1.bf16.msk.msra.mxu0 %vm2123_vm4, %v2502_v27  ;;  %vm2061_vm7 = vmpackc.low %vm651_vm0, %vm650_vm15  ;;  %vm881_vm15 = vcmp.eq.s32.totalorder %v2707_v29, %v2667_v22  ;;  %vm532_vm1 = vcmp.eq.s32.totalorder %v2704_v28, %v2677_v25  ;;  %vm764_vm4 = vcmp.eq.s32.totalorder %v2704_v28, %v2680_v26  ;;  %v2756_v32 = vadd.s32 48, %v2641_v10  ;;  %p2408_p4 = pneg %p2407_p2  ;;  %p2414_p7 = por %p2413_p6, %p2412_p5 }
  0xfa   : > { %2062 = vmatprep.subr.msk.bf16.mxu1 %vm2061_vm7, %v2502_v27  ;;  %vm2125_vm10 = vmpackc.low %vm883_vm3, %vm882_vm2  ;;  %vm533_vm2 = vcmp.eq.s32.totalorder %v2707_v29, %v2677_v25  ;;  %vm646_vm7 = vcmp.eq.s32.totalorder %v2730_v30, %v2664_v21  ;;  %v2759_v33 = vadd.s32 56, %v2641_v10  ;;  %v2782_v34 = vadd.s32 32, %v2641_v10 }
  0xfb   : > { %2126 = vmatprep.subr.msk.bf16.mxu0 %vm2125_vm10, %v2502_v27  ;;  %vm2063_vm13 = vmpackc.low %vm535_vm6, %vm534_vm5  ;;  %vm765_vm5 = vcmp.eq.s32.totalorder %v2707_v29, %v2680_v26  ;;  %vm878_vm10 = vcmp.eq.s32.totalorder %v2730_v30, %v2667_v22  ;;  %v2785_v35 = vadd.s32 40, %v2641_v10  ;;  %v2808_v36 = vadd.s32 16, %v2641_v10  ;;  %p2415_p9 = pnand %p2414_p7, %p2408_p4 }
  0xfc   : > { %2064 = vmatpush1.bf16.msk.msra.mxu1 %vm2063_vm13, %v2502_v27  ;;  %vm2127_vm0 = vmpackc.low %vm767_vm9, %vm766_vm8  ;;  %vm647_vm8 = vcmp.eq.s32.totalorder %v2733_v31, %v2664_v21  ;;  %vm530_vm13 = vcmp.eq.s32.totalorder %v2730_v30, %v2677_v25  ;;  %v2811_v37 = vadd.s32 24, %v2641_v10  ;;  %v2829_v38 = vadd.s32 8, %v2641_v10 }
  0xfd   : > { %2128 = vmatpush1.bf16.msk.msra.mxu0 %vm2127_vm0, %v2502_v27  ;;  %vm2065_vm3 = vmpackc.low %vm649_vm12, %vm648_vm11  ;;  %vm879_vm11 = vcmp.eq.s32.totalorder %v2733_v31, %v2667_v22  ;;  %vm762_vm0 = vcmp.eq.s32.totalorder %v2730_v30, %v2680_v26  ;;  %v2851_v39 = vadd.s32 240, %v2641_v10  ;;  %v2861_v40 = vadd.s32 248, %v2641_v10 }
  0xfe   : > { %2066 = vmatprep.subr.msk.bf16.mxu1 %vm2065_vm3, %v2502_v27  ;;  %vm2129_vm6 = vmpackc.low %vm881_vm15, %vm880_vm14  ;;  %vm531_vm14 = vcmp.eq.s32.totalorder %v2733_v31, %v2677_v25  ;;  %vm644_vm3 = vcmp.eq.s32.totalorder %v2756_v32, %v2664_v21  ;;  %v2875_v41 = vadd.s32 224, %v2641_v10  ;;  %v2878_v42 = vadd.s32 232, %v2641_v10 }
  0xff   : > { %2130 = vmatprep.subr.msk.bf16.mxu0 %vm2129_vm6, %v2502_v27  ;;  %vm2067_vm9 = vmpackc.low %vm533_vm2, %vm532_vm1  ;;  %vm763_vm1 = vcmp.eq.s32.totalorder %v2733_v31, %v2680_v26  ;;  %vm876_vm6 = vcmp.eq.s32.totalorder %v2756_v32, %v2667_v22  ;;  %v2894_v43 = vadd.s32 208, %v2641_v10  ;;  %v2940_v44 = vadd.s32 216, %v2641_v10 }
 0x100   : > { %2068 = vmatpush1.bf16.msk.msra.mxu1 %vm2067_vm9, %v2502_v27  ;;  %vm2131_vm12 = vmpackc.low %vm765_vm5, %vm764_vm4  ;;  %vm645_vm4 = vcmp.eq.s32.totalorder %v2759_v33, %v2664_v21  ;;  %vm528_vm9 = vcmp.eq.s32.totalorder %v2756_v32, %v2677_v25  ;;  %v2954_v45 = vadd.s32 192, %v2641_v10  ;;  %v2957_v46 = vadd.s32 200, %v2641_v10 }
 0x101   : > { %2132 = vmatpush1.bf16.msk.msra.mxu0 %vm2131_vm12, %v2502_v27  ;;  %vm2069_vm15 = vmpackc.low %vm647_vm8, %vm646_vm7  ;;  %vm877_vm7 = vcmp.eq.s32.totalorder %v2759_v33, %v2667_v22  ;;  %vm760_vm12 = vcmp.eq.s32.totalorder %v2756_v32, %v2680_v26  ;;  %v2988_v47 = vadd.s32 176, %v2641_v10  ;;  %v3002_v48 = vadd.s32 184, %v2641_v10 }
 0x102   : > { %2070 = vmatprep.subr.msk.bf16.mxu1 %vm2069_vm15, %v2502_v27  ;;  %vm2133_vm2 = vmpackc.low %vm879_vm11, %vm878_vm10  ;;  %vm529_vm10 = vcmp.eq.s32.totalorder %v2759_v33, %v2677_v25  ;;  %vm642_vm15 = vcmp.eq.s32.totalorder %v2782_v34, %v2664_v21  ;;  %v1100_v49 = vsub.s32 5, %v2641_v10  ;;  %v3047_v50 = vadd.s32 160, %v2641_v10 }
 0x103   : > { %2134 = vmatprep.subr.msk.bf16.mxu0 %vm2133_vm2, %v2502_v27  ;;  %vm2071_vm5 = vmpackc.low %vm531_vm14, %vm530_vm13  ;;  %vm761_vm13 = vcmp.eq.s32.totalorder %v2759_v33, %v2680_v26  ;;  %vm874_vm2 = vcmp.eq.s32.totalorder %v2782_v34, %v2667_v22  ;;  %v3050_v51 = vadd.s32 168, %v2641_v10  ;;  %v3053_v52 = vadd.s32 144, %v2641_v10 }
 0x104   : > { %2072 = vmatpush1.bf16.msk.msra.mxu1 %vm2071_vm5, %v2502_v27  ;;  %vm2135_vm8 = vmpackc.low %vm763_vm1, %vm762_vm0  ;;  %vm643_vm0 = vcmp.eq.s32.totalorder %v2785_v35, %v2664_v21  ;;  %vm526_vm5 = vcmp.eq.s32.totalorder %v2782_v34, %v2677_v25  ;;  %v3067_v53 = vrot.slane %v2646_v13, %v1100_v49  ;;  %v1332_v54 = vsub.s32 7, %v2641_v10 }
 0x105   : > { %2136 = vmatpush1.bf16.msk.msra.mxu0 %vm2135_vm8, %v2502_v27  ;;  %vm2073_vm11 = vmpackc.low %vm645_vm4, %vm644_vm3  ;;  %vm875_vm3 = vcmp.eq.s32.totalorder %v2785_v35, %v2667_v22  ;;  %vm758_vm8 = vcmp.eq.s32.totalorder %v2782_v34, %v2680_v26  ;;  %v984_v55 = vsub.s32 4, %v2641_v10  ;;  %v1216_v56 = vsub.s32 6, %v2641_v10 }
 0x106   : > { %2074 = vmatprep.subr.msk.bf16.mxu1 %vm2073_vm11, %v2502_v27  ;;  %vm2137_vm14 = vmpackc.low %vm877_vm7, %vm876_vm6  ;;  %vm527_vm6 = vcmp.eq.s32.totalorder %v2785_v35, %v2677_v25  ;;  %vm640_vm11 = vcmp.eq.s32.totalorder %v2808_v36, %v2664_v21  ;;  %v3084_v57 = vadd.s32 152, %v2641_v10  ;;  %v3087_v58 = vadd.s32 128, %v2641_v10 }
 0x107   : > { %2138 = vmatprep.subr.msk.bf16.mxu0 %vm2137_vm14, %v2502_v27  ;;  %vm2075_vm1 = vmpackc.low %vm529_vm10, %vm528_vm9  ;;  %vm759_vm9 = vcmp.eq.s32.totalorder %v2785_v35, %v2680_v26  ;;  %vm872_vm14 = vcmp.eq.s32.totalorder %v2808_v36, %v2667_v22  ;;  %v3090_v59 = vadd.s32 136, %v2641_v10  ;;  %v3108_v60 = vrot.slane %v2646_v13, %v1332_v54 }
 0x108   : > { %2076 = vmatpush1.bf16.msk.msra.mxu1 %vm2075_vm1, %v2502_v27  ;;  %vm2139_vm4 = vmpackc.low %vm761_vm13, %vm760_vm12  ;;  %vm641_vm12 = vcmp.eq.s32.totalorder %v2811_v37, %v2664_v21  ;;  %v3111_v61 = vrot.slane %v2646_v13, %v984_v55  ;;  %v3125_v62 = vrot.slane %v2646_v13, %v1216_v56 }
 0x109   : > { %2140 = vmatpush1.bf16.msk.msra.mxu0 %vm2139_vm4, %v2502_v27  ;;  %vm2077_vm7 = vmpackc.low %vm643_vm0, %vm642_vm15  ;;  %vm873_vm15 = vcmp.eq.s32.totalorder %v2811_v37, %v2667_v22  ;;  %vm638_vm0 = vcmp.eq.s32.totalorder %v2641_v10, %v2664_v21  ;;  %vm756_vm4 = vcmp.eq.s32.totalorder %v2808_v36, %v2680_v26 }
 0x10a   : > { %2078 = vmatprep.subr.msk.bf16.mxu1 %vm2077_vm7, %v2502_v27  ;;  %vm2141_vm10 = vmpackc.low %vm875_vm3, %vm874_vm2  ;;  %vm524_vm2 = vcmp.eq.s32.totalorder %v2808_v36, %v2677_v25  ;;  %vm525_vm3 = vcmp.eq.s32.totalorder %v2811_v37, %v2677_v25  ;;  %vm639_vm7 = vcmp.eq.s32.totalorder %v2829_v38, %v2664_v21 }
 0x10b   : > { %2142 = vmatprep.subr.msk.bf16.mxu0 %vm2141_vm10, %v2502_v27  ;;  %vm2079_vm13 = vmpackc.low %vm527_vm6, %vm526_vm5  ;;  %vm757_vm6 = vcmp.eq.s32.totalorder %v2811_v37, %v2680_v26  ;;  %vm871_vm10 = vcmp.eq.s32.totalorder %v2829_v38, %v2667_v22 }
 0x10c   : > { %2080 = vmatpush1.bf16.msk.msra.mxu1 %vm2079_vm13, %v2502_v27  ;;  %vm2143_vm1 = vmpackc.low %vm759_vm9, %vm758_vm8  ;;  %vm870_vm8 = vcmp.eq.s32.totalorder %v2641_v10, %v2667_v22  ;;  %vm523_vm13 = vcmp.eq.s32.totalorder %v2829_v38, %v2677_v25 }
 0x10d   : > { %2144 = vmatpush1.bf16.msk.msra.mxu0 %vm2143_vm1, %v2502_v27  ;;  %vm2081_vm5 = vmpackc.low %vm641_vm12, %vm640_vm11  ;;  %vm522_vm11 = vcmp.eq.s32.totalorder %v2641_v10, %v2677_v25 }
 0x10e   : > { %2082 = vmatprep.subr.msk.bf16.mxu1 %vm2081_vm5, %v2502_v27  ;;  %vm2145_vm9 = vmpackc.low %vm873_vm15, %vm872_vm14  ;;  %vm754_vm14 = vcmp.eq.s32.totalorder %v2641_v10, %v2680_v26  ;;  %vm755_vm15 = vcmp.eq.s32.totalorder %v2829_v38, %v2680_v26  ;;  %vm898_vm5 = vcmp.eq.s32.totalorder %v2875_v41, %v2667_v22 }
 0x10f   : > { %2146 = vmatprep.subr.msk.bf16.mxu0 %vm2145_vm9, %v2502_v27  ;;  %vm2083_vm12 = vmpackc.low %vm525_vm3, %vm524_vm2  ;;  %vm668_vm2 = vcmp.eq.s32.totalorder %v2851_v39, %v2664_v21  ;;  %vm900_vm3 = vcmp.eq.s32.totalorder %v2851_v39, %v2667_v22  ;;  %vm785_vm9 = vcmp.eq.s32.totalorder %v2861_v40, %v2680_v26 }
 0x110   : > { %2084 = vmatpush1.bf16.msk.msra.mxu1 %vm2083_vm12, %v2502_v27  ;;  %vm2147_vm1 = vmpackc.low %vm757_vm6, %vm756_vm4  ;;  %vm669_vm6 = vcmp.eq.s32.totalorder %v2861_v40, %v2664_v21  ;;  %vm901_vm12 = vcmp.eq.s32.totalorder %v2861_v40, %v2667_v22 }
 0x111   : > { %2148 = vmatpush1.bf16.msk.msra.mxu0 %vm2147_vm1, %v2502_v27  ;;  %vm2085_vm4 = vmpackc.low %vm639_vm7, %vm638_vm0  ;;  %vm666_vm7 = vcmp.eq.s32.totalorder %v2875_v41, %v2664_v21  ;;  %vm667_vm1 = vcmp.eq.s32.totalorder %v2878_v42, %v2664_v21 }
 0x112   : > { %2086 = vmatprep.subr.msk.bf16.mxu1 %vm2085_vm4, %v2502_v27  ;;  %vm2149_vm0 = vmpackc.low %vm871_vm10, %vm870_vm8  ;;  %vm664_vm10 = vcmp.eq.s32.totalorder %v2894_v43, %v2664_v21  ;;  %vm4117_vm4 = vcmp.eq.s32.totalorder %v2861_v40, %v2677_v25 }
 0x113   : > { %2150 = vmatprep.subr.msk.bf16.mxu0 %vm2149_vm0, %v2502_v27  ;;  %vm2087_vm8 = vmpackc.low %vm523_vm13, %vm522_vm11  ;;  %vm551_vm13 = vcmp.eq.s32.totalorder %v2878_v42, %v2677_v25  ;;  %vm782_vm0 = vcmp.eq.s32.totalorder %v2875_v41, %v2680_v26 }
 0x114   : > { %2088 = vmatpush1.bf16.msk.msra.mxu1 %vm2087_vm8, %v2502_v27  ;;  %vm2151_vm11 = vmpackc.low %vm755_vm15, %vm754_vm14  ;;  %vm895_vm8 = vcmp.eq.s32.totalorder %v2957_v46, %v2667_v22  ;;  %vm547_vm15 = vcmp.eq.s32.totalorder %v2957_v46, %v2677_v25 }
 0x115   : > { %2152 = vmatpush1.bf16.msk.msra.mxu0 %vm2151_vm11, %v2502_v27  ;;  %vm2089_vm14 = vmpackc.low %vm669_vm6, %vm668_vm2  ;;  %vm665_vm6 = vcmp.eq.s32.totalorder %v2940_v44, %v2664_v21  ;;  %vm546_vm11 = vcmp.eq.s32.totalorder %v2954_v45, %v2677_v25 }
 0x116   : > { %2090 = vmatprep.subr.msk.bf16.mxu1 %vm2089_vm14, %v2502_v27  ;;  %vm2153_vm2 = vmpackc.low %vm901_vm12, %vm900_vm3  ;;  %vm4116_vm14 = vcmp.eq.s32.totalorder %v2851_v39, %v2677_v25  ;;  %vm549_vm12 = vcmp.eq.s32.totalorder %v2940_v44, %v2677_v25 }
 0x117   : > { %2154 = vmatprep.subr.msk.bf16.mxu0 %vm2153_vm2, %v2502_v27  ;;  %vm2091_vm3 = vmpackc.low %vm4117_vm4, %vm4116_vm14  ;;  %vm4118_vm2 = vcmp.eq.s32.totalorder %v2851_v39, %v2680_v26  ;;  %vm894_vm14 = vcmp.eq.s32.totalorder %v2954_v45, %v2667_v22 }
 0x118   : > { %2092 = vmatpush2.bf16.msk.msra.mxu1 %vm2091_vm3, %v2502_v27  ;;  %vm2155_vm4 = vmpackc.low %vm785_vm9, %vm4118_vm2  ;;  %vm778_vm3 = vcmp.eq.s32.totalorder %v2954_v45, %v2680_v26 }
 0x119   : > { %2156 = vmatpush2.bf16.msk.msra.mxu0 %vm2155_vm4, %v2502_v27  ;;  %vm2093_vm9 = vmpackc.low %vm667_vm1, %vm666_vm7  ;;  %vm4119_vm7 = vcmp.eq.s32.totalorder %v2878_v42, %v2667_v22  ;;  %vm775_vm4 = vcmp.eq.s32.totalorder %v3050_v51, %v2680_v26 }
 0x11a   : > { %2094 = vmatprep.subr.msk.bf16.mxu1 %vm2093_vm9, %v2502_v27  ;;  %vm2157_vm1 = vmpackc.low %vm4119_vm7, %vm898_vm5  ;;  %vm4120_vm5 = vcmp.eq.s32.totalorder %v2875_v41, %v2677_v25 }
 0x11b   : > { %2158 = vmatprep.subr.msk.bf16.mxu0 %vm2157_vm1, %v2502_v27  ;;  %vm2095_vm9 = vmpackc.low %vm551_vm13, %vm4120_vm5  ;;  %vm4121_vm13 = vcmp.eq.s32.totalorder %v2878_v42, %v2680_v26  ;;  %vm544_vm5 = vcmp.eq.s32.totalorder %v2988_v47, %v2677_v25 }
 0x11c   : > { %2096 = vmatpush2.bf16.msk.msra.mxu1 %vm2095_vm9, %v2502_v27  ;;  %vm2159_vm1 = vmpackc.low %vm4121_vm13, %vm782_vm0  ;;  %vm658_vm9 = vcmp.eq.s32.totalorder %v3047_v50, %v2664_v21 }
 0x11d   : > { %2160 = vmatpush2.bf16.msk.msra.mxu0 %vm2159_vm1, %v2502_v27  ;;  %vm2097_vm0 = vmpackc.low %vm665_vm6, %vm664_vm10  ;;  %vm4122_vm10 = vcmp.eq.s32.totalorder %v2894_v43, %v2667_v22  ;;  %vm4123_vm6 = vcmp.eq.s32.totalorder %v2940_v44, %v2667_v22  ;;  %vm657_vm1 = vcmp.eq.s32.totalorder %v3084_v57, %v2664_v21 }
 0x11e   : > { %2098 = vmatprep.subr.msk.bf16.mxu1 %vm2097_vm0, %v2502_v27  ;;  %vm2161_vm13 = vmpackc.low %vm4123_vm6, %vm4122_vm10  ;;  %vm4124_vm10 = vcmp.eq.s32.totalorder %v2894_v43, %v2677_v25 }
 0x11f   : > { %2162 = vmatprep.subr.msk.bf16.mxu0 %vm2161_vm13, %v2502_v27  ;;  %vm2099_vm6 = vmpackc.low %vm549_vm12, %vm4124_vm10  ;;  %vm4125_vm12 = vcmp.eq.s32.totalorder %v2894_v43, %v2680_v26  ;;  %vm4126_vm10 = vcmp.eq.s32.totalorder %v2940_v44, %v2680_v26  ;;  %vm774_vm13 = vcmp.eq.s32.totalorder %v3047_v50, %v2680_v26 }
 0x120   : > { %2100 = vmatpush2.bf16.msk.msra.mxu1 %vm2099_vm6, %v2502_v27  ;;  %vm2163_vm7 = vmpackc.low %vm4126_vm10, %vm4125_vm12  ;;  %vm4127_vm12 = vcmp.eq.s32.totalorder %v2954_v45, %v2664_v21  ;;  %vm4128_vm10 = vcmp.eq.s32.totalorder %v2957_v46, %v2664_v21 }
 0x121   : > { %2164 = vmatpush2.bf16.msk.msra.mxu0 %vm2163_vm7, %v2502_v27  ;;  %vm2101_vm2 = vmpackc.low %vm4128_vm10, %vm4127_vm12  ;;  %vm656_vm10 = vcmp.eq.s32.totalorder %v3053_v52, %v2664_v21 }
 0x122   : > { %2102 = vmatprep.subr.msk.bf16.mxu1 %vm2101_vm2, %v2502_v27  ;;  %vm2165_vm12 = vmpackc.low %vm895_vm8, %vm894_vm14  ;;  %vm888_vm14 = vcmp.eq.s32.totalorder %v3053_v52, %v2667_v22 }
 0x123   : > { %2166 = vmatprep.subr.msk.bf16.mxu0 %vm2165_vm12, %v2502_v27  ;;  %vm2103_vm8 = vmpackc.low %vm547_vm15, %vm546_vm11  ;;  %vm4129_vm15 = vcmp.eq.s32.totalorder %v2957_v46, %v2680_v26  ;;  %vm4171_vm12 = vcmp.eq.s32.totalorder %v2707_v29, %v3108_v60 }
 0x124   : > { %2104 = vmatpush2.bf16.msk.msra.mxu1 %vm2103_vm8, %v2502_v27  ;;  %vm2167_vm11 = vmpackc.low %vm4129_vm15, %vm778_vm3  ;;  %vm4130_vm3 = vcmp.eq.s32.totalorder %v2988_v47, %v2664_v21  ;;  %vm4131_vm15 = vcmp.eq.s32.totalorder %v3002_v48, %v2664_v21  ;;  %vm654_vm8 = vcmp.eq.s32.totalorder %v3087_v58, %v2664_v21 }
 0x125   : > { %2168 = vmatpush2.bf16.msk.msra.mxu0 %vm2167_vm11, %v2502_v27  ;;  %vm2105_vm6 = vmpackc.low %vm4131_vm15, %vm4130_vm3  ;;  %vm4132_vm3 = vcmp.eq.s32.totalorder %v2988_v47, %v2667_v22  ;;  %vm4133_vm15 = vcmp.eq.s32.totalorder %v3002_v48, %v2667_v22  ;;  %vm1334_vm11 = vcmp.eq.s32.totalorder %v2641_v10, %v3108_v60 }
 0x126   : > { %2106 = vmatprep.subr.msk.bf16.mxu1 %vm2105_vm6, %v2502_v27  ;;  %vm2169_vm7 = vmpackc.low %vm4133_vm15, %vm4132_vm3  ;;  %vm4134_vm3 = vcmp.eq.s32.totalorder %v3002_v48, %v2677_v25  ;;  %vm538_vm6 = vcmp.eq.s32.totalorder %v3087_v58, %v2677_v25 }
 0x127   : > { %2170 = vmatprep.subr.msk.bf16.mxu0 %vm2169_vm7, %v2502_v27  ;;  %vm2107_vm15 = vmpackc.low %vm4134_vm3, %vm544_vm5  ;;  %vm4135_vm5 = vcmp.eq.s32.totalorder %v2988_v47, %v2680_v26  ;;  %vm4136_vm3 = vcmp.eq.s32.totalorder %v3002_v48, %v2680_v26  ;;  %vm770_vm7 = vcmp.eq.s32.totalorder %v3087_v58, %v2680_v26 }
 0x128   : > { %2108 = vmatpush2.bf16.msk.msra.mxu1 %vm2107_vm15, %v2502_v27  ;;  %vm2171_vm2 = vmpackc.low %vm4136_vm3, %vm4135_vm5  ;;  %vm4137_vm5 = vcmp.eq.s32.totalorder %v3050_v51, %v2664_v21  ;;  %vm1103_vm15 = vcmp.eq.s32.totalorder %v2829_v38, %v3067_v53 }
 0x129   : > { %2172 = vmatpush2.bf16.msk.msra.mxu0 %vm2171_vm2, %v2502_v27  ;;  %vm2109_vm3 = vmpackc.low %vm4137_vm5, %vm658_vm9  ;;  %vm4138_vm9 = vcmp.eq.s32.totalorder %v3047_v50, %v2667_v22  ;;  %vm4139_vm5 = vcmp.eq.s32.totalorder %v3050_v51, %v2667_v22 }
 0x12a   : > { %2110 = vmatprep.subr.msk.bf16.mxu1 %vm2109_vm3, %v2502_v27  ;;  %vm2173_vm0 = vmpackc.low %vm4139_vm5, %vm4138_vm9  ;;  %vm4140_vm3 = vcmp.eq.s32.totalorder %v3047_v50, %v2677_v25  ;;  %vm4141_vm9 = vcmp.eq.s32.totalorder %v3050_v51, %v2677_v25 }
 0x12b   : > { %2174 = vmatprep.subr.msk.bf16.mxu0 %vm2173_vm0, %v2502_v27  ;;  %vm2111_vm5 = vmpackc.low %vm4141_vm9, %vm4140_vm3  ;;  %vm987_vm3 = vcmp.eq.s32.totalorder %v2829_v38, %v3111_v61  ;;  %vm1218_vm9 = vcmp.eq.s32.totalorder %v2641_v10, %v3125_v62 }
 0x12c   : > { %2112 = vmatpush2.bf16.msk.msra.mxu1 %vm2111_vm5, %v2502_v27  ;;  %vm2175_vm0 = vmpackc.low %vm775_vm4, %vm774_vm13  ;;  %vm1133_vm13 = vcmp.eq.s32.totalorder %v2861_v40, %v3067_v53  ;;  %vm4161_vm5 = vcmp.eq.s32.totalorder %v2673_v24, %v3067_v53 }
 0x12d   : > { %2176 = vmatpush2.bf16.msk.msra.mxu0 %vm2175_vm0, %v2502_v27  ;;  %vm2113_vm4 = vmpackc.low %vm657_vm1, %vm656_vm10  ;;  %vm4142_vm1 = vcmp.eq.s32.totalorder %v3084_v57, %v2667_v22  ;;  %vm1015_vm0 = vcmp.eq.s32.totalorder %v2878_v42, %v3111_v61 }
 0x12e   : > { %2114 = vmatprep.subr.msk.bf16.mxu1 %vm2113_vm4, %v2502_v27  ;;  %vm2177_vm10 = vmpackc.low %vm4142_vm1, %vm888_vm14  ;;  %vm4143_vm4 = vcmp.eq.s32.totalorder %v3053_v52, %v2677_v25  ;;  %vm4144_vm14 = vcmp.eq.s32.totalorder %v3084_v57, %v2677_v25 }
 0x12f   : > { %2178 = vmatprep.subr.msk.bf16.mxu0 %vm2177_vm10, %v2502_v27  ;;  %vm2115_vm1 = vmpackc.low %vm4144_vm14, %vm4143_vm4  ;;  %vm4145_vm10 = vcmp.eq.s32.totalorder %v3053_v52, %v2680_v26  ;;  %vm4146_vm4 = vcmp.eq.s32.totalorder %v3084_v57, %v2680_v26 }
 0x130   : > { %2116 = vmatpush2.bf16.msk.msra.mxu1 %vm2115_vm1, %v2502_v27  ;;  %vm2179_vm14 = vmpackc.low %vm4146_vm4, %vm4145_vm10  ;;  %vm4147_vm1 = vcmp.eq.s32.totalorder %v3090_v59, %v2664_v21  ;;  %vm1013_vm4 = vcmp.eq.s32.totalorder %v2940_v44, %v3111_v61 }
 0x131   : > { %2180 = vmatpush2.bf16.msk.msra.mxu0 %vm2179_vm14, %v2502_v27  ;;  %vm2117_vm10 = vmpackc.low %vm4147_vm1, %vm654_vm8  ;;  %vm4148_vm14 = vcmp.eq.s32.totalorder %v3087_v58, %v2667_v22  ;;  %vm4149_vm8 = vcmp.eq.s32.totalorder %v3090_v59, %v2667_v22 }
 0x132   : > { %2118 = vmatprep.subr.msk.bf16.mxu1 %vm2117_vm10, %v2502_v27  ;;  %vm2181_vm1 = vmpackc.low %vm4149_vm8, %vm4148_vm14  ;;  %vm4150_vm10 = vcmp.eq.s32.totalorder %v3090_v59, %v2677_v25 }
 0x133   : > { %2182 = vmatprep.subr.msk.bf16.mxu0 %vm2181_vm1, %v2502_v27  ;;  %vm2119_vm14 = vmpackc.low %vm4150_vm10, %vm538_vm6  ;;  %vm4151_vm6 = vcmp.eq.s32.totalorder %v3090_v59, %v2680_v26  ;;  %vm4159_vm10 = vcmp.eq.s32.totalorder %v2656_v16, %v3125_v62 }
 0x134   : > { %2120 = vmatpush2.bf16.msk.msra.mxu1 %vm2119_vm14, %v2502_v27  ;;  %vm2183_vm1 = vmpackc.low %vm4151_vm6, %vm770_vm7  ;;  %vm4152_vm14 = vcmp.eq.s32.totalorder %v2653_v15, %v3067_v53  ;;  %vm4153_vm7 = vcmp.eq.s32.totalorder %v2656_v16, %v3067_v53 }
 0x135   : > { %2184 = vmatpush2.bf16.msk.msra.mxu0 %vm2183_vm1, %v2502_v27  ;;  %vm2185_vm6 = vmpackc.low %vm4153_vm7, %vm4152_vm14  ;;  %vm4154_vm1 = vcmp.eq.s32.totalorder %v2653_v15, %v3108_v60  ;;  %vm4155_vm14 = vcmp.eq.s32.totalorder %v2656_v16, %v3108_v60 }
 0x136   : > { %2186 = vmatprep.subr.msk.bf16.mxu1 %vm2185_vm6, %v2502_v27  ;;  %vm2249_vm7 = vmpackc.low %vm4155_vm14, %vm4154_vm1  ;;  %vm4156_vm6 = vcmp.eq.s32.totalorder %v2653_v15, %v3111_v61  ;;  %vm4157_vm1 = vcmp.eq.s32.totalorder %v2656_v16, %v3111_v61 }
 0x137   : > { %1491 = vmatmul.mubr.bf16.vlgmr.msra.gmra.mxu1 %v2643_v11  ;;  %2250 = vmatprep.subr.msk.bf16.mxu0 %vm2249_vm7, %v2502_v27  ;;  %vm2187_vm14 = vmpackc.low %vm4157_vm1, %vm4156_vm6  ;;  %vm4158_vm7 = vcmp.eq.s32.totalorder %v2653_v15, %v3125_v62 }
 0x138   : > { %1532 = vmatmul.mubr.bf16.vlgmr.msra.gmra.mxu0 %v2643_v11  ;;  %2188 = vmatpush1.bf16.msk.msra.mxu1 %vm2187_vm14, %v2502_v27  ;;  %vm2251_vm6 = vmpackc.low %vm4159_vm10, %vm4158_vm7  ;;  %vm4160_vm14 = vcmp.eq.s32.totalorder %v2670_v23, %v3067_v53  ;;  %vm4183_vm7 = vcmp.eq.s32.totalorder %v2733_v31, %v3125_v62 }
 0x139   : > { %2252 = vmatpush1.bf16.msk.msra.mxu0 %vm2251_vm6, %v2502_v27  ;;  %vm2189_vm8 = vmpackc.low %vm4161_vm5, %vm4160_vm14  ;;  %vm4162_vm6 = vcmp.eq.s32.totalorder %v2670_v23, %v3108_v60  ;;  %vm4163_vm5 = vcmp.eq.s32.totalorder %v2673_v24, %v3108_v60  ;;  %1572 = vmatprep.mubr.bf16.mxu1 %v2650_v14 }
 0x13a   : > { %2190 = vmatprep.subr.msk.bf16.mxu1 %vm2189_vm8, %v2502_v27  ;;  %vm2253_vm14 = vmpackc.low %vm4163_vm5, %vm4162_vm6  ;;  %vm4164_vm8 = vcmp.eq.s32.totalorder %v2670_v23, %v3111_v61  ;;  %vm4165_vm6 = vcmp.eq.s32.totalorder %v2673_v24, %v3111_v61  ;;  %1613 = vmatprep.mubr.bf16.mxu0 %v2650_v14 }
 0x13b   : > { %2254 = vmatprep.subr.msk.bf16.mxu0 %vm2253_vm14, %v2502_v27  ;;  %vm2191_vm5 = vmpackc.low %vm4165_vm6, %vm4164_vm8  ;;  %vm4166_vm14 = vcmp.eq.s32.totalorder %v2670_v23, %v3125_v62  ;;  %vm4167_vm8 = vcmp.eq.s32.totalorder %v2673_v24, %v3125_v62 }
 0x13c   : > { %2192 = vmatpush1.bf16.msk.msra.mxu1 %vm2191_vm5, %v2502_v27  ;;  %vm2255_vm6 = vmpackc.low %vm4167_vm8, %vm4166_vm14  ;;  %vm4168_vm5 = vcmp.eq.s32.totalorder %v2704_v28, %v3067_v53  ;;  %vm4169_vm14 = vcmp.eq.s32.totalorder %v2707_v29, %v3067_v53 }
 0x13d   : > { %2256 = vmatpush1.bf16.msk.msra.mxu0 %vm2255_vm6, %v2502_v27  ;;  %vm2193_vm8 = vmpackc.low %vm4169_vm14, %vm4168_vm5  ;;  %vm4170_vm6 = vcmp.eq.s32.totalorder %v2704_v28, %v3108_v60  ;;  %vm4172_vm5 = vcmp.eq.s32.totalorder %v2704_v28, %v3111_v61  ;;  %vm4173_vm14 = vcmp.eq.s32.totalorder %v2707_v29, %v3111_v61 }
 0x13e   : > { %2194 = vmatprep.subr.msk.bf16.mxu1 %vm2193_vm8, %v2502_v27  ;;  %vm2257_vm2 = vmpackc.low %vm4171_vm12, %vm4170_vm6  ;;  %vm4174_vm8 = vcmp.eq.s32.totalorder %v2704_v28, %v3125_v62  ;;  %vm4175_vm12 = vcmp.eq.s32.totalorder %v2707_v29, %v3125_v62 }
 0x13f   : > { %2258 = vmatprep.subr.msk.bf16.mxu0 %vm2257_vm2, %v2502_v27  ;;  %vm2195_vm10 = vmpackc.low %vm4173_vm14, %vm4172_vm5  ;;  %vm4176_vm2 = vcmp.eq.s32.totalorder %v2730_v30, %v3067_v53  ;;  %vm4177_vm5 = vcmp.eq.s32.totalorder %v2733_v31, %v3067_v53 }
 0x140   : > { %2196 = vmatpush1.bf16.msk.msra.mxu1 %vm2195_vm10, %v2502_v27  ;;  %vm2259_vm6 = vmpackc.low %vm4175_vm12, %vm4174_vm8  ;;  %vm4178_vm10 = vcmp.eq.s32.totalorder %v2730_v30, %v3108_v60  ;;  %vm4179_vm8 = vcmp.eq.s32.totalorder %v2733_v31, %v3108_v60 }
 0x141   : > { %2260 = vmatpush1.bf16.msk.msra.mxu0 %vm2259_vm6, %v2502_v27  ;;  %vm2197_vm14 = vmpackc.low %vm4177_vm5, %vm4176_vm2  ;;  %vm4180_vm6 = vcmp.eq.s32.totalorder %v2730_v30, %v3111_v61  ;;  %vm4181_vm2 = vcmp.eq.s32.totalorder %v2733_v31, %v3111_v61 }
 0x142   : > { %2198 = vmatprep.subr.msk.bf16.mxu1 %vm2197_vm14, %v2502_v27  ;;  %vm2261_vm12 = vmpackc.low %vm4179_vm8, %vm4178_vm10  ;;  %vm4182_vm14 = vcmp.eq.s32.totalorder %v2730_v30, %v3125_v62  ;;  %vm4184_vm10 = vcmp.eq.s32.totalorder %v2756_v32, %v3067_v53  ;;  %vm4185_vm8 = vcmp.eq.s32.totalorder %v2759_v33, %v3067_v53 }
 0x143   : > { %2262 = vmatprep.subr.msk.bf16.mxu0 %vm2261_vm12, %v2502_v27  ;;  %vm2199_vm5 = vmpackc.low %vm4181_vm2, %vm4180_vm6  ;;  %vm4186_vm6 = vcmp.eq.s32.totalorder %v2756_v32, %v3108_v60  ;;  %vm4187_vm2 = vcmp.eq.s32.totalorder %v2759_v33, %v3108_v60 }
 0x144   : > { %2200 = vmatpush1.bf16.msk.msra.mxu1 %vm2199_vm5, %v2502_v27  ;;  %vm2263_vm1 = vmpackc.low %vm4183_vm7, %vm4182_vm14  ;;  %vm4189_vm7 = vcmp.eq.s32.totalorder %v2759_v33, %v3111_v61 }
 0x145   : > { %2264 = vmatpush1.bf16.msk.msra.mxu0 %vm2263_vm1, %v2502_v27  ;;  %vm2201_vm12 = vmpackc.low %vm4185_vm8, %vm4184_vm10  ;;  %vm4188_vm1 = vcmp.eq.s32.totalorder %v2756_v32, %v3111_v61  ;;  %vm4190_vm10 = vcmp.eq.s32.totalorder %v2756_v32, %v3125_v62  ;;  %vm4191_vm8 = vcmp.eq.s32.totalorder %v2759_v33, %v3125_v62 }
 0x146   : > { %2202 = vmatprep.subr.msk.bf16.mxu1 %vm2201_vm12, %v2502_v27  ;;  %vm2265_vm5 = vmpackc.low %vm4187_vm2, %vm4186_vm6  ;;  %vm4192_vm6 = vcmp.eq.s32.totalorder %v2782_v34, %v3067_v53  ;;  %vm4193_vm2 = vcmp.eq.s32.totalorder %v2785_v35, %v3067_v53 }
 0x147   : > { %2266 = vmatprep.subr.msk.bf16.mxu0 %vm2265_vm5, %v2502_v27  ;;  %vm2203_vm14 = vmpackc.low %vm4189_vm7, %vm4188_vm1  ;;  %vm4194_vm1 = vcmp.eq.s32.totalorder %v2782_v34, %v3108_v60  ;;  %vm4195_vm7 = vcmp.eq.s32.totalorder %v2785_v35, %v3108_v60 }
 0x148   : > { %2204 = vmatpush1.bf16.msk.msra.mxu1 %vm2203_vm14, %v2502_v27  ;;  %vm2267_vm12 = vmpackc.low %vm4191_vm8, %vm4190_vm10  ;;  %vm4196_vm10 = vcmp.eq.s32.totalorder %v2782_v34, %v3111_v61  ;;  %vm4197_vm8 = vcmp.eq.s32.totalorder %v2785_v35, %v3111_v61 }
 0x149   : > { %2268 = vmatpush1.bf16.msk.msra.mxu0 %vm2267_vm12, %v2502_v27  ;;  %vm2205_vm5 = vmpackc.low %vm4193_vm2, %vm4192_vm6  ;;  %vm4198_vm6 = vcmp.eq.s32.totalorder %v2782_v34, %v3125_v62  ;;  %vm4199_vm2 = vcmp.eq.s32.totalorder %v2785_v35, %v3125_v62 }
 0x14a   : > { %2206 = vmatprep.subr.msk.bf16.mxu1 %vm2205_vm5, %v2502_v27  ;;  %vm2269_vm14 = vmpackc.low %vm4195_vm7, %vm4194_vm1  ;;  %vm4200_vm1 = vcmp.eq.s32.totalorder %v2808_v36, %v3067_v53  ;;  %vm4201_vm7 = vcmp.eq.s32.totalorder %v2811_v37, %v3067_v53 }
 0x14b   : > { %2270 = vmatprep.subr.msk.bf16.mxu0 %vm2269_vm14, %v2502_v27  ;;  %vm2207_vm12 = vmpackc.low %vm4197_vm8, %vm4196_vm10  ;;  %vm4202_vm10 = vcmp.eq.s32.totalorder %v2808_v36, %v3108_v60  ;;  %vm4203_vm8 = vcmp.eq.s32.totalorder %v2811_v37, %v3108_v60 }
 0x14c   : > { %2208 = vmatpush1.bf16.msk.msra.mxu1 %vm2207_vm12, %v2502_v27  ;;  %vm2271_vm5 = vmpackc.low %vm4199_vm2, %vm4198_vm6  ;;  %vm4204_vm6 = vcmp.eq.s32.totalorder %v2808_v36, %v3111_v61  ;;  %vm4205_vm2 = vcmp.eq.s32.totalorder %v2811_v37, %v3111_v61 }
 0x14d   : > { %2272 = vmatpush1.bf16.msk.msra.mxu0 %vm2271_vm5, %v2502_v27  ;;  %vm2209_vm14 = vmpackc.low %vm4201_vm7, %vm4200_vm1  ;;  %vm4206_vm1 = vcmp.eq.s32.totalorder %v2808_v36, %v3125_v62  ;;  %vm4207_vm7 = vcmp.eq.s32.totalorder %v2811_v37, %v3125_v62 }
 0x14e   : > { %2210 = vmatprep.subr.msk.bf16.mxu1 %vm2209_vm14, %v2502_v27  ;;  %vm2273_vm12 = vmpackc.low %vm4203_vm8, %vm4202_vm10  ;;  %vm4208_vm10 = vcmp.eq.s32.totalorder %v2641_v10, %v3067_v53 }
 0x14f   : > { %2274 = vmatprep.subr.msk.bf16.mxu0 %vm2273_vm12, %v2502_v27  ;;  %vm2211_vm5 = vmpackc.low %vm4205_vm2, %vm4204_vm6  ;;  %vm4209_vm12 = vcmp.eq.s32.totalorder %v2829_v38, %v3108_v60  ;;  %vm4210_vm2 = vcmp.eq.s32.totalorder %v2641_v10, %v3111_v61 }
 0x150   : > { %2212 = vmatpush1.bf16.msk.msra.mxu1 %vm2211_vm5, %v2502_v27  ;;  %vm2275_vm14 = vmpackc.low %vm4207_vm7, %vm4206_vm1 }
 0x151   : > { %2276 = vmatpush1.bf16.msk.msra.mxu0 %vm2275_vm14, %v2502_v27  ;;  %vm2213_vm8 = vmpackc.low %vm1103_vm15, %vm4208_vm10  ;;  %vm4211_vm15 = vcmp.eq.s32.totalorder %v2829_v38, %v3125_v62  ;;  %vm4214_vm14 = vcmp.eq.s32.totalorder %v2861_v40, %v3108_v60 }
 0x152   : > { %2214 = vmatprep.subr.msk.bf16.mxu1 %vm2213_vm8, %v2502_v27  ;;  %vm2277_vm6 = vmpackc.low %vm4209_vm12, %vm1334_vm11  ;;  %vm4212_vm11 = vcmp.eq.s32.totalorder %v2851_v39, %v3067_v53  ;;  %vm4216_vm8 = vcmp.eq.s32.totalorder %v2861_v40, %v3111_v61 }
 0x153   : > { %2278 = vmatprep.subr.msk.bf16.mxu0 %vm2277_vm6, %v2502_v27  ;;  %vm2215_vm5 = vmpackc.low %vm987_vm3, %vm4210_vm2  ;;  %vm4213_vm3 = vcmp.eq.s32.totalorder %v2851_v39, %v3108_v60  ;;  %vm4218_vm6 = vcmp.eq.s32.totalorder %v2861_v40, %v3125_v62 }
 0x154   : > { %2216 = vmatpush1.bf16.msk.msra.mxu1 %vm2215_vm5, %v2502_v27  ;;  %vm2279_vm1 = vmpackc.low %vm4211_vm15, %vm1218_vm9  ;;  %vm4215_vm9 = vcmp.eq.s32.totalorder %v2851_v39, %v3111_v61  ;;  %vm4219_vm5 = vcmp.eq.s32.totalorder %v2875_v41, %v3067_v53  ;;  %vm4220_vm15 = vcmp.eq.s32.totalorder %v2878_v42, %v3067_v53 }
 0x155   : > { %2280 = vmatpush1.bf16.msk.msra.mxu0 %vm2279_vm1, %v2502_v27  ;;  %vm2217_vm7 = vmpackc.low %vm1133_vm13, %vm4212_vm11  ;;  %vm4217_vm13 = vcmp.eq.s32.totalorder %v2851_v39, %v3125_v62  ;;  %vm4221_vm11 = vcmp.eq.s32.totalorder %v2875_v41, %v3108_v60 }
 0x156   : > { %2218 = vmatprep.subr.msk.bf16.mxu1 %vm2217_vm7, %v2502_v27  ;;  %vm2281_vm10 = vmpackc.low %vm4214_vm14, %vm4213_vm3  ;;  %vm4222_vm7 = vcmp.eq.s32.totalorder %v2878_v42, %v3108_v60  ;;  %vm4223_vm14 = vcmp.eq.s32.totalorder %v2875_v41, %v3111_v61 }
 0x157   : > { %2282 = vmatprep.subr.msk.bf16.mxu0 %vm2281_vm10, %v2502_v27  ;;  %vm2219_vm12 = vmpackc.low %vm4216_vm8, %vm4215_vm9  ;;  %vm4224_vm9 = vcmp.eq.s32.totalorder %v2875_v41, %v3125_v62  ;;  %vm4225_vm8 = vcmp.eq.s32.totalorder %v2878_v42, %v3125_v62 }
 0x158   : > { %2220 = vmatpush2.bf16.msk.msra.mxu1 %vm2219_vm12, %v2502_v27  ;;  %vm2283_vm2 = vmpackc.low %vm4218_vm6, %vm4217_vm13  ;;  %vm4226_vm13 = vcmp.eq.s32.totalorder %v2894_v43, %v3067_v53  ;;  %vm4227_vm6 = vcmp.eq.s32.totalorder %v2940_v44, %v3067_v53 }
 0x159   : > { %2284 = vmatpush2.bf16.msk.msra.mxu0 %vm2283_vm2, %v2502_v27  ;;  %vm2221_vm1 = vmpackc.low %vm4220_vm15, %vm4219_vm5  ;;  %vm4229_vm5 = vcmp.eq.s32.totalorder %v2940_v44, %v3108_v60 }
 0x15a   : > { %2222 = vmatprep.subr.msk.bf16.mxu1 %vm2221_vm1, %v2502_v27  ;;  %vm2285_vm3 = vmpackc.low %vm4222_vm7, %vm4221_vm11  ;;  %vm4230_vm1 = vcmp.eq.s32.totalorder %v2894_v43, %v3111_v61  ;;  %vm4231_vm7 = vcmp.eq.s32.totalorder %v2894_v43, %v3125_v62 }
 0x15b   : > { %2286 = vmatprep.subr.msk.bf16.mxu0 %vm2285_vm3, %v2502_v27  ;;  %vm2223_vm10 = vmpackc.low %vm1015_vm0, %vm4223_vm14  ;;  %vm4228_vm0 = vcmp.eq.s32.totalorder %v2894_v43, %v3108_v60  ;;  %vm4232_vm3 = vcmp.eq.s32.totalorder %v2940_v44, %v3125_v62 }
 0x15c   : > { %2224 = vmatpush2.bf16.msk.msra.mxu1 %vm2223_vm10, %v2502_v27  ;;  %vm2287_vm12 = vmpackc.low %vm4225_vm8, %vm4224_vm9  ;;  %vm4233_vm10 = vcmp.eq.s32.totalorder %v2954_v45, %v3067_v53  ;;  %vm4234_vm9 = vcmp.eq.s32.totalorder %v2957_v46, %v3067_v53 }
 0x15d   : > { %2288 = vmatpush2.bf16.msk.msra.mxu0 %vm2287_vm12, %v2502_v27  ;;  %vm2225_vm2 = vmpackc.low %vm4227_vm6, %vm4226_vm13  ;;  %vm4236_vm12 = vcmp.eq.s32.totalorder %v2957_v46, %v3108_v60  ;;  %vm4237_vm6 = vcmp.eq.s32.totalorder %v2954_v45, %v3111_v61 }
 0x15e   : > { %2226 = vmatprep.subr.msk.bf16.mxu1 %vm2225_vm2, %v2502_v27  ;;  %vm2289_vm15 = vmpackc.low %vm4229_vm5, %vm4228_vm0  ;;  %vm4238_vm2 = vcmp.eq.s32.totalorder %v2957_v46, %v3111_v61  ;;  %vm4239_vm5 = vcmp.eq.s32.totalorder %v2954_v45, %v3125_v62 }
 0x15f   : > { %2290 = vmatprep.subr.msk.bf16.mxu0 %vm2289_vm15, %v2502_v27  ;;  %vm2227_vm11 = vmpackc.low %vm1013_vm4, %vm4230_vm1  ;;  %vm4235_vm4 = vcmp.eq.s32.totalorder %v2954_v45, %v3108_v60  ;;  %vm4240_vm15 = vcmp.eq.s32.totalorder %v2957_v46, %v3125_v62 }
 0x160   : > { %2228 = vmatpush2.bf16.msk.msra.mxu1 %vm2227_vm11, %v2502_v27  ;;  %vm2291_vm14 = vmpackc.low %vm4232_vm3, %vm4231_vm7  ;;  %vm4241_vm11 = vcmp.eq.s32.totalorder %v2988_v47, %v3067_v53  ;;  %vm4242_vm7 = vcmp.eq.s32.totalorder %v3002_v48, %v3067_v53 }
 0x161   : > { %2292 = vmatpush2.bf16.msk.msra.mxu0 %vm2291_vm14, %v2502_v27  ;;  %vm2229_vm8 = vmpackc.low %vm4234_vm9, %vm4233_vm10  ;;  %vm4243_vm14 = vcmp.eq.s32.totalorder %v2988_v47, %v3108_v60  ;;  %vm4244_vm10 = vcmp.eq.s32.totalorder %v3002_v48, %v3108_v60 }
 0x162   : > { %2230 = vmatprep.subr.msk.bf16.mxu1 %vm2229_vm8, %v2502_v27  ;;  %vm2293_vm13 = vmpackc.low %vm4236_vm12, %vm4235_vm4  ;;  %vm4245_vm8 = vcmp.eq.s32.totalorder %v2988_v47, %v3111_v61  ;;  %vm4246_vm4 = vcmp.eq.s32.totalorder %v3002_v48, %v3111_v61 }
 0x163   : > { %2294 = vmatprep.subr.msk.bf16.mxu0 %vm2293_vm13, %v2502_v27  ;;  %vm2231_vm0 = vmpackc.low %vm4238_vm2, %vm4237_vm6  ;;  %vm4247_vm13 = vcmp.eq.s32.totalorder %v2988_v47, %v3125_v62  ;;  %vm4248_vm6 = vcmp.eq.s32.totalorder %v3002_v48, %v3125_v62 }
 0x164   : > { %2232 = vmatpush2.bf16.msk.msra.mxu1 %vm2231_vm0, %v2502_v27  ;;  %vm2295_vm1 = vmpackc.low %vm4240_vm15, %vm4239_vm5  ;;  %vm4249_vm0 = vcmp.eq.s32.totalorder %v3047_v50, %v3067_v53  ;;  %vm4250_vm5 = vcmp.eq.s32.totalorder %v3050_v51, %v3067_v53 }
 0x165   : > { %2296 = vmatpush2.bf16.msk.msra.mxu0 %vm2295_vm1, %v2502_v27  ;;  %vm2233_vm3 = vmpackc.low %vm4242_vm7, %vm4241_vm11  ;;  %vm4251_vm1 = vcmp.eq.s32.totalorder %v3047_v50, %v3108_v60  ;;  %vm4252_vm11 = vcmp.eq.s32.totalorder %v3050_v51, %v3108_v60 }
 0x166   : > { %2234 = vmatprep.subr.msk.bf16.mxu1 %vm2233_vm3, %v2502_v27  ;;  %vm2297_vm9 = vmpackc.low %vm4244_vm10, %vm4243_vm14  ;;  %vm4253_vm3 = vcmp.eq.s32.totalorder %v3047_v50, %v3111_v61  ;;  %vm4254_vm14 = vcmp.eq.s32.totalorder %v3050_v51, %v3111_v61 }
 0x167   : > { %2298 = vmatprep.subr.msk.bf16.mxu0 %vm2297_vm9, %v2502_v27  ;;  %vm2235_vm12 = vmpackc.low %vm4246_vm4, %vm4245_vm8  ;;  %vm4255_vm9 = vcmp.eq.s32.totalorder %v3047_v50, %v3125_v62  ;;  %vm4256_vm8 = vcmp.eq.s32.totalorder %v3050_v51, %v3125_v62 }
 0x168   : > { %2236 = vmatpush2.bf16.msk.msra.mxu1 %vm2235_vm12, %v2502_v27  ;;  %vm2299_vm2 = vmpackc.low %vm4248_vm6, %vm4247_vm13  ;;  %vm4257_vm12 = vcmp.eq.s32.totalorder %v3053_v52, %v3067_v53  ;;  %vm4258_vm13 = vcmp.eq.s32.totalorder %v3084_v57, %v3067_v53 }
 0x169   : > { %2300 = vmatpush2.bf16.msk.msra.mxu0 %vm2299_vm2, %v2502_v27  ;;  %vm2237_vm15 = vmpackc.low %vm4250_vm5, %vm4249_vm0  ;;  %vm4259_vm2 = vcmp.eq.s32.totalorder %v3053_v52, %v3108_v60  ;;  %vm4260_vm0 = vcmp.eq.s32.totalorder %v3084_v57, %v3108_v60 }
 0x16a   : > { %2238 = vmatprep.subr.msk.bf16.mxu1 %vm2237_vm15, %v2502_v27  ;;  %vm2301_vm7 = vmpackc.low %vm4252_vm11, %vm4251_vm1  ;;  %vm4261_vm15 = vcmp.eq.s32.totalorder %v3053_v52, %v3111_v61  ;;  %vm4262_vm1 = vcmp.eq.s32.totalorder %v3084_v57, %v3111_v61  ;;  %v1625_v14 = vpop.permute.xlu0 %1624 }
 0x16b   : > { %2302 = vmatprep.subr.msk.bf16.mxu0 %vm2301_vm7, %v2502_v27  ;;  %vm2239_vm10 = vmpackc.low %vm4254_vm14, %vm4253_vm3  ;;  %vm4263_vm7 = vcmp.eq.s32.totalorder %v3053_v52, %v3125_v62  ;;  %vm4264_vm3 = vcmp.eq.s32.totalorder %v3084_v57, %v3125_v62 }
 0x16c   : > { %2240 = vmatpush2.bf16.msk.msra.mxu1 %vm2239_vm10, %v2502_v27  ;;  %vm2303_vm4 = vmpackc.low %vm4256_vm8, %vm4255_vm9  ;;  %vm4265_vm10 = vcmp.eq.s32.totalorder %v3087_v58, %v3067_v53  ;;  %vm4266_vm9 = vcmp.eq.s32.totalorder %v3090_v59, %v3067_v53 }
 0x16d   : > { %2304 = vmatpush2.bf16.msk.msra.mxu0 %vm2303_vm4, %v2502_v27  ;;  %vm2241_vm6 = vmpackc.low %vm4258_vm13, %vm4257_vm12  ;;  %vm4267_vm4 = vcmp.eq.s32.totalorder %v3087_v58, %v3108_v60  ;;  %vm4268_vm12 = vcmp.eq.s32.totalorder %v3090_v59, %v3108_v60 }
 0x16e   : > { %2242 = vmatprep.subr.msk.bf16.mxu1 %vm2241_vm6, %v2502_v27  ;;  %vm2305_vm5 = vmpackc.low %vm4260_vm0, %vm4259_vm2  ;;  %vm4269_vm6 = vcmp.eq.s32.totalorder %v3087_v58, %v3111_v61  ;;  %vm4270_vm2 = vcmp.eq.s32.totalorder %v3090_v59, %v3111_v61  ;;  %v1638_v19 = vpop.permute.xlu0 %1637 }
 0x16f   : > { %2306 = vmatprep.subr.msk.bf16.mxu0 %vm2305_vm5, %v2502_v27  ;;  %vm2243_vm11 = vmpackc.low %vm4262_vm1, %vm4261_vm15  ;;  %vm4271_vm5 = vcmp.eq.s32.totalorder %v3087_v58, %v3125_v62  ;;  %vm4272_vm15 = vcmp.eq.s32.totalorder %v3090_v59, %v3125_v62 }
 0x170   : > { %2244 = vmatpush2.bf16.msk.msra.mxu1 %vm2243_vm11, %v2502_v27  ;;  %vm2307_vm14 = vmpackc.low %vm4264_vm3, %vm4263_vm7 }
 0x171   : > { %2308 = vmatpush2.bf16.msk.msra.mxu0 %vm2307_vm14, %v2502_v27  ;;  %vm2245_vm8 = vmpackc.low %vm4266_vm9, %vm4265_vm10 }
 0x172   : > { %2246 = vmatprep.subr.msk.bf16.mxu1 %vm2245_vm8, %v2502_v27  ;;  %vm2309_vm13 = vmpackc.low %vm4268_vm12, %vm4267_vm4 }
 0x173   : > { %2310 = vmatprep.subr.msk.bf16.mxu0 %vm2309_vm13, %v2502_v27  ;;  %vm2247_vm0 = vmpackc.low %vm4270_vm2, %vm4269_vm6 }
 0x174   : > { %2248 = vmatpush2.bf16.msk.msra.mxu1 %vm2247_vm0, %v2502_v27  ;;  %vm2311_vm1 = vmpackc.low %vm4272_vm15, %vm4271_vm5 }
 0x175   : > { %2312 = vmatpush2.bf16.msk.msra.mxu0 %vm2311_vm1, %v2502_v27 }
 0x177   : > { %1573 = vmatmul.mubr.bf16.vlgmr.msra.gmra.mxu1 %v2404_v2 }
 0x178   : > { %1614 = vmatmul.mubr.bf16.vlgmr.msra.gmra.mxu0 %v2404_v2 }
 0x1b1   : > { %v478_v3 = vpop.f32.mrf.mxu0 }
 0x1b3   : > { %v2325_v4 = vpop.f32.mrf.mxu0 }
 0x1f7   : > { %v1492_v5 = vpop.f32.mrf.mxu1 }
 0x1f8   : > { %v1533_v6 = vpop.f32.mrf.mxu0  ;;  %v1493_v15 = vadd.f32 %v1492_v5, %v478_v3 }
 0x1f9   : > { %v1494_v7 = vpop.f32.mrf.mxu1  ;;  %v1534_v17 = vadd.f32 %v1533_v6, %v478_v3 }
 0x1fa   : > { %v1535_v8 = vpop.f32.mrf.mxu0  ;;  %v1495_v13 = vadd.f32 %v1494_v7, %v478_v3  ;;  %v1627_v18 = vmul.f32 %v1625_v14, %v1493_v15 }
 0x1fb   : > { %v1496_v9 = vpop.f32.mrf.mxu1  ;;  %v1629_v21 = vmul.f32 %v1625_v14, %v1534_v17  ;;  %v1536_v22 = vadd.f32 %v1535_v8, %v478_v3 }
 0x1fc   : > { %v1537_v10 = vpop.f32.mrf.mxu0  ;;  %v1628_v16 = vmul.f32 %v1625_v14, %v1495_v13  ;;  %v1640_v23 = vadd.f32 %v1638_v19, %v1627_v18 }
 0x1fd   : > { %v1497_v11 = vpop.f32.mrf.mxu1  ;;  %v1630_v25 = vmul.f32 %v1625_v14, %v1536_v22  ;;  %v1642_v26 = vadd.f32 %v1638_v19, %v1629_v21 }
 0x1fe   : > { %v1538_v12 = vpop.f32.mrf.mxu0  ;;  %v1641_v20 = vadd.f32 %v1638_v19, %v1628_v16  ;;  %v1648_v27 = vmul.f32 0.2, %v1640_v23 }
 0x1ff   : > { %v1643_v29 = vadd.f32 %v1638_v19, %v1630_v25  ;;  %v1650_v30 = vmul.f32 0.2, %v1642_v26 }
 0x200   : > { %v1649_v24 = vmul.f32 0.2, %v1641_v20  ;;  %v1656_v31 = vmax.f32 %v1640_v23, %v1648_v27 }
 0x201   : > { %v1651_v39 = vmul.f32 0.2, %v1643_v29  ;;  %v1658_v40 = vmax.f32 %v1642_v26, %v1650_v30 }
 0x202   : > { %v1657_v28 = vmax.f32 %v1641_v20, %v1649_v24 }
 0x203   : > { %v1659_v54 = vmax.f32 %v1643_v29, %v1651_v39 }
 0x204   : > { %v1664_v34 = vmax.f32 %v1656_v31, %v1657_v28 }
 0x206   : > { %v1665_v47 = vmax.f32 %v1664_v34, %v1658_v40 }
 0x208   : > { %v1666_v59 = vmax.f32 %v1665_v47, %v1659_v54 }
 0x237   : > { %v1574_v32 = vpop.f32.mrf.mxu1 }
 0x238   : > { %v1575_v33 = vadd.f32 %v1574_v32, %v478_v3  ;;  %v1615_v35 = vpop.f32.mrf.mxu0 }
 0x239   : > { %v1616_v36 = vadd.f32 %v1615_v35, %v478_v3  ;;  %v1576_v37 = vpop.f32.mrf.mxu1 }
 0x23a   : > { %v1631_v38 = vmul.f32 %v1625_v14, %v1575_v33  ;;  %v1577_v41 = vadd.f32 %v1576_v37, %v478_v3  ;;  %v1617_v42 = vpop.f32.mrf.mxu0 }
 0x23b   : > { %v1633_v43 = vmul.f32 %v1625_v14, %v1616_v36  ;;  %v1618_v44 = vadd.f32 %v1617_v42, %v478_v3  ;;  %v1578_v45 = vpop.f32.mrf.mxu1 }
 0x23c   : > { %v1644_v46 = vadd.f32 %v1638_v19, %v1631_v38  ;;  %v1632_v48 = vmul.f32 %v1625_v14, %v1577_v41  ;;  %v1619_v49 = vpop.f32.mrf.mxu0 }
 0x23d   : > { %v1646_v50 = vadd.f32 %v1638_v19, %v1633_v43  ;;  %v1634_v51 = vmul.f32 %v1625_v14, %v1618_v44  ;;  %v1579_v52 = vpop.f32.mrf.mxu1 }
 0x23e   : > { %v1652_v53 = vmul.f32 0.2, %v1644_v46  ;;  %v1645_v55 = vadd.f32 %v1638_v19, %v1632_v48  ;;  %v1620_v56 = vpop.f32.mrf.mxu0 }
 0x23f   : > { %v1647_v57 = vadd.f32 %v1638_v19, %v1634_v51  ;;  %v1654_v60 = vmul.f32 0.2, %v1646_v50 }
 0x240   : > { %v1660_v58 = vmax.f32 %v1644_v46, %v1652_v53  ;;  %v1653_v61 = vmul.f32 0.2, %v1645_v55 }
 0x241   : > { %v1655_v0 = vmul.f32 0.2, %v1647_v57  ;;  %v1662_v1 = vmax.f32 %v1646_v50, %v1654_v60 }
 0x242   : > { %v1667_v62 = vmax.f32 %v1666_v59, %v1660_v58  ;;  %v1661_v63 = vmax.f32 %v1645_v55, %v1653_v61 }
 0x243   : > { %v1663_v3 = vmax.f32 %v1647_v57, %v1655_v0 }
 0x244   : > { %v1668_v2 = vmax.f32 %v1667_v62, %v1661_v63 }
 0x246   : > { %v1669_v4 = vmax.f32 %v1668_v2, %v1662_v1 }
 0x248   : > { %v1670_v5 = vmax.f32 %v1669_v4, %v1663_v3 }
 0x24a   : > { %1671 = vst [vmem:[%s281_s16] sm:$0xf] %v1670_v5 }
 0x24b   : > { %2418 = shalt.err (!%p2415_p9)
}
 0x24c   : > { %s2419_s9 = scalar_lea.hbm %s1686_s7, 64  ;;  %s2423_s12 = scalar_lea.hbm %s4104_s6, 256 }
 0x24d   : > { %p2420_p10 = scmp.ne.s32.totalorder %s1686_s7, %s2419_s9  ;;  %p2424_p13 = scmp.lt.s32.totalorder %s1686_s7, %s4104_s6 }
 0x24e   : > { %p2425_p0 = scmp.lt.s32.totalorder %s2423_s12, %s2419_s9 }
 0x24f   : > { %p2421_p11 = pnand %p2420_p10, %p2591_p3 }
 0x250   : > { %p2426_p1 = por %p2425_p0, %p2424_p13 }
 0x251   : > { %p2422_p12 = pneg %p2421_p11 }
 0x253   : > { %p2427_p2 = pnand %p2426_p1, %p2422_p12 }
 0x255   : > { %2430 = shalt.err (!%p2427_p2)
}
 0x256   : > { %2326 = dma.vmem_to_hbm [thread:$0]  (%p2591_p3), %s1689_s20, 64, %s1686_s7, %s1673_s29  }
 0x257 PF: > { %p2332_p4 = scmp.ge.s32.totalorder %s2497_s28, 2  ;;  %s1700_s19 = sand.u32 1, %s2469_s21  }
 0x258   : > { %s1701_s25 = scalar_lea.sflag [#allocation4], %s1700_s19 }
 0x259   : > { %p2329_p5 = pnand %p2332_p4, %p2600_p8 }
 0x25b   : > { %p2330_p6 = pneg %p2329_p5 }
 0x25d   : > { %2464 = dma.done.wait (%p2330_p6), %s1701_s25, 64  }
 0x25e   : > { %2466 = vsyncadd (%p2330_p6), %s1701_s25, 4294967232  ;;  %s19_s28 = sadd.s32 1, %s2497_s28   ;;  %s4274_s24 = sld [smem:[#allocation6_spill]] }
 0x25f   : > { %p16_p7 = scmp.ge.s32.totalorder %s19_s28, 6   ;;  %s4275_s25 = sld [smem:[#allocation7_spill]] }
 0x260   : > { %s4276_s26 = sld [smem:[#allocation8_spill]]  ;;  %s4278_s21 = smov %s2473_s22 }
 0x261   : > { %s4277_s27 = sld [smem:[#allocation9_spill]]  ;;  %s4279_s22 = smov %s2477_s23 }
 0x262   : > { %s4280_s23 = smov %s2609_s15  ;;  %18 = sbr.rel (!%p16_p7) target bundleno = 5 (0x5), region = 87 }
 0x267   :  { %1706 = vsyncpa [#allocation4], 1 }
 0x268   :  { %1708 = vsyncpa [#allocation4 + $0x1], 1 }

</bundles_post_ra>
